<compile_context>
chip_gen: v6e
topology: v6e:2x2x1
jax: 0.10.0
libtpu: 0.0.40
codegen_flags: <defaults>
</compile_context>

<pallas_src>
import jax
import jax.numpy as jnp
from jax.experimental import pallas as pl
from jax.experimental.pallas import tpu as pltpu

LAYER_DIMS = (512, 256, 64, 32, 16, 1)  # layer1, layer2, layer4, layer5, layer6, layer7


def _round_up(x, m):
    return ((x + m - 1) // m) * m


def _vmem_capacity_bytes():
    """Physical per-core VMEM, used to pick per-generation tiles and limits."""
    try:
        return int(pltpu.get_tpu_info().vmem_capacity_bytes)
    except Exception:
        return 64 << 20  # conservative (v7x-sized) fallback


def pack_params(params, compute_dtype=jnp.bfloat16):
    """Pack PyTorch-layout (W (out,in), b (out,1)) pairs into two slabs.

    Returns:
      w_packed: (rows_pad, max_in) bf16, weights row-stacked & column-padded.
      b_packed: (rows_pad, 1) f32, biases row-stacked.
      dims:     static tuple of (row_offset, out_dim, in_dim) per layer.
    Row offsets land on multiples of 16 (bf16 sublane packing) by construction.
    Done once, outside the per-call forward (no per-call weight casts).
    """
    dims = []
    row = 0
    for w, _ in params:
        dims.append((row, int(w.shape[0]), int(w.shape[1])))
        row += int(w.shape[0])
    max_in = max(d[2] for d in dims)
    rows_pad = _round_up(row, 16)
    cols_pad = _round_up(max_in, 128)
    w_packed = jnp.zeros((rows_pad, cols_pad), compute_dtype)
    b_packed = jnp.zeros((rows_pad, 1), jnp.float32)
    for (off, o, i), (w, b) in zip(dims, params):
        w_packed = w_packed.at[off:off + o, :i].set(w.astype(compute_dtype))
        b_packed = b_packed.at[off:off + o, :].set(b.astype(jnp.float32))
    return w_packed, b_packed, tuple(dims)


def classification_nn_forward(x, w_packed, b_packed, *, dims, tile_b=None):
    """x: (B, input_size) (bf16 or f32). w_packed/b_packed/dims from pack_params."""
    B, D = x.shape
    assert D == dims[0][2], "input feature size mismatch"
    n_layers = len(dims)
    compute_dtype = w_packed.dtype

    vmem_cap = _vmem_capacity_bytes()
    two_core = vmem_cap < (100 << 20)  # v7x-like: 64 MiB VMEM / 2 TensorCores

    # ---- batch tile: multiple of 128 lanes, per-generation cap --------------
    cap = 2048 if two_core else 4096
    tile = cap if tile_b is None else int(tile_b)
    tile = min(tile, cap, _round_up(B, 128))
    tile = max(128, (tile // 128) * 128)
    if two_core and B > 128:
        # Give both TensorCores work on the "parallel" grid axis.
        tile = min(tile, max(128, _round_up(pl.cdiv(B, 2), 128)))
        nt = pl.cdiv(B, tile)
        if nt > 2 and nt % 2 == 1:
            tile = max(128, _round_up(pl.cdiv(B, nt + 1), 128))
    num_tiles = pl.cdiv(B, tile)
    B_pad = num_tiles * tile
    need_mask = (B % tile) != 0  # ragged tail handled in-kernel (no host padding)

    def kernel(x_ref, wp_ref, bp_ref, o_ref):
        x_blk = x_ref[...]                                          # (tile, D)
        if need_mask:
            row = (jax.lax.broadcasted_iota(jnp.int32, (tile, 1), 0)
                   + pl.program_id(0) * tile)
            x_blk = jnp.where(row < B, x_blk, jnp.zeros_like(x_blk))

        h = None
        logits = None
        for li, (off, out_d, in_d) in enumerate(dims):
            w = wp_ref[off:off + out_d, 0:in_d]                     # (out, in) bf16
            b = bp_ref[off:off + out_d, :]                          # (out, 1)  f32
            # First layer: fuse the (tile, D) -> (D, tile) flip into the dot RHS.
            rhs = x_blk.astype(compute_dtype).T if li == 0 else h
            acc = jnp.dot(w, rhs, preferred_element_type=jnp.float32) + b
            if li < n_layers - 1:
                # f32 accumulate + bias + ReLU, then store activations in bf16.
                h = jnp.maximum(acc, 0.0).astype(compute_dtype)
            else:
                logits = acc                                        # (1, tile) f32

        # Numerically-stable exact sigmoid (tiny (1, tile) tensor).
        z = jnp.exp(-jnp.abs(logits))
        o_ref[...] = jnp.where(logits >= 0.0, 1.0, z) / (1.0 + z)

    in_specs = [
        pl.BlockSpec((tile, D), lambda i: (i, 0)),          # streamed activations
        pl.BlockSpec(w_packed.shape, lambda i: (0, 0)),     # resident weight slab
        pl.BlockSpec(b_packed.shape, lambda i: (0, 0)),     # resident bias slab
    ]
    out_spec = pl.BlockSpec((1, tile), lambda i: (0, i))    # lane-dense output

    # Scoped-VMEM budget: streamed blocks (double-buffered) + resident params +
    # live f32/bf16 intermediates, with headroom; capped by physical VMEM.
    act_bytes = tile * sum(d[1] for d in dims) * 4
    io_bytes = 2 * tile * D * x.dtype.itemsize + 2 * tile * 4
    par_bytes = 2 * (w_packed.size * w_packed.dtype.itemsize
                     + b_packed.shape[0] * 128 * 4)
    vmem_limit = int(1.5 * (act_bytes + io_bytes + par_bytes)) + (4 << 20)
    vmem_limit = max(32 << 20, vmem_limit)
    vmem_limit = min(vmem_limit, vmem_cap - (16 << 20))

    flops = 2 * B_pad * sum(o * i for (_, o, i) in dims)
    bytes_accessed = (x.size * x.dtype.itemsize + B_pad * 4
                      + w_packed.size * w_packed.dtype.itemsize
                      + b_packed.size * 4)

    out = pl.pallas_call(
        kernel,
        out_shape=jax.ShapeDtypeStruct((1, B_pad), jnp.float32),
        grid_spec=pltpu.PrefetchScalarGridSpec(
            num_scalar_prefetch=0,
            grid=(num_tiles,),
            in_specs=in_specs,
            out_specs=out_spec,
        ),
        compiler_params=pltpu.CompilerParams(
            dimension_semantics=("parallel",),
            vmem_limit_bytes=int(vmem_limit),
        ),
        cost_estimate=pl.CostEstimate(
            flops=int(flops),
            transcendentals=int(B_pad),
            bytes_accessed=int(bytes_accessed),
        ),
    )(x, w_packed, b_packed)

    return out[0, :B].reshape(B, 1)


def init_params(key, input_size):
    """PyTorch-style init: W (out, in), b (out, 1), U[-1/sqrt(in), 1/sqrt(in)]."""
    params = []
    fan_in = input_size
    for out_dim in LAYER_DIMS:
        key, kw, kb = jax.random.split(key, 3)
        bound = 1.0 / float(fan_in) ** 0.5
        w = jax.random.uniform(kw, (out_dim, fan_in), jnp.float32, -bound, bound)
        b = jax.random.uniform(kb, (out_dim, 1), jnp.float32, -bound, bound)
        params.append((w, b))
        fan_in = out_dim
    return params


def reference_forward(x, params):
    h = x
    for i, (w, b) in enumerate(params):
        h = h @ w.T + b.T
        if i < len(params) - 1:
            h = jnp.maximum(h, 0.0)
    return jax.nn.sigmoid(h)


if __name__ == "__main__":
    key = jax.random.PRNGKey(0)
    key, kx = jax.random.split(key)

    batch = 200       # not a multiple of 128: exercises the in-kernel tail mask
    input_size = 32   # the module's Linear(input_size, 512) entry layer

    # Input produced directly in bf16 (producer-side cast, no extra wrapper pass).
    x = jax.random.normal(kx, (batch, input_size), dtype=jnp.bfloat16)

    params = init_params(key, input_size)
    w_packed, b_packed, dims = pack_params(params)   # one-time packing / bf16 cast

    fwd = jax.jit(classification_nn_forward, static_argnames=("dims", "tile_b"))
    out = fwd(x, w_packed, b_packed, dims=dims)
    out = jax.block_until_ready(out)

    ref = reference_forward(x.astype(jnp.float32), params)
    assert out.shape == (batch, 1)
    # bf16 MXU operands + bf16 activations vs f32 reference: inference tolerance.
    assert jnp.allclose(out, ref, atol=3e-2, rtol=0.0), "mismatch vs. JAX reference"

    print("KERNEL_OK")
</pallas_src>

<mosaic_0001>
module attributes {stable_mosaic.version = 11 : i64} {
  func.func @kernel(%arg0: i32, %arg1: memref<128x32xbf16, #tpu.memory_space<vmem>>, %arg2: memref<896x512xbf16, #tpu.memory_space<vmem>>, %arg3: memref<896x1xf32, #tpu.memory_space<vmem>>, %arg4: memref<1x128xf32, #tpu.memory_space<vmem>>) attributes {dimension_semantics = [#tpu.dimension_semantics<parallel>], iteration_bounds = array<i64: 2>, scalar_prefetch = 0 : i64, scratch_operands = 0 : i64, tpu.core_type = #tpu.core_type<tc>, window_params = [{transform_indices = @transform_0, window_bounds = array<i64: 128, 32>}, {pipeline_mode = #tpu.pipeline_mode<synchronous>, transform_indices = @transform_1, window_bounds = array<i64: 896, 512>}, {pipeline_mode = #tpu.pipeline_mode<synchronous>, transform_indices = @transform_2, window_bounds = array<i64: 896, 1>}, {transform_indices = @transform_3, window_bounds = array<i64: 1, 128>}]} {
    %c0 = arith.constant 0 : index
    %c0_0 = arith.constant 0 : index
    %0 = vector.load %arg1[%c0, %c0_0] : memref<128x32xbf16, #tpu.memory_space<vmem>>, vector<128x32xbf16>
    %1 = tpu.iota {dimensions = array<i32: 0>} : vector<128x1xi32>
    %c128_i32 = arith.constant 128 : i32
    %2 = arith.muli %arg0, %c128_i32 : i32
    %3 = vector.broadcast %2 : i32 to vector<128x1xi32>
    %4 = arith.addi %1, %3 : vector<128x1xi32>
    %c200_i32 = arith.constant 200 : i32
    %5 = vector.broadcast %c200_i32 : i32 to vector<128x1xi32>
    %6 = arith.cmpi slt, %4, %5 : vector<128x1xi32>
    %cst = arith.constant 0.000000e+00 : bf16
    %7 = vector.broadcast %cst : bf16 to vector<128x32xbf16>
    %8 = vector.shape_cast %6 : vector<128x1xi1> to vector<128x1xi1>
    %9 = vector.broadcast %8 : vector<128x1xi1> to vector<128x32xi1>
    %10 = arith.select %9, %0, %7 : vector<128x32xi1>, vector<128x32xbf16>
    %c0_1 = arith.constant 0 : index
    %c0_2 = arith.constant 0 : index
    %11 = vector.load %arg2[%c0_1, %c0_2] : memref<896x512xbf16, #tpu.memory_space<vmem>>, vector<512x32xbf16>
    %c0_3 = arith.constant 0 : index
    %c0_4 = arith.constant 0 : index
    %12 = vector.load %arg3[%c0_3, %c0_4] : memref<896x1xf32, #tpu.memory_space<vmem>>, vector<512x1xf32>
    %13 = tpu.transpose %10, [1, 0] : vector<128x32xbf16> -> vector<32x128xbf16>
    %cst_5 = arith.constant dense<0.000000e+00> : vector<512x128xf32>
    %14 = tpu.matmul %11, %13, %cst_5 {dimension_numbers = #tpu.dot_dimension_numbers<[1], [0], [0], [1], [0, 0, 1, 1], [], []>} : vector<512x32xbf16>, vector<32x128xbf16>, vector<512x128xf32> -> vector<512x128xf32>
    %15 = vector.broadcast %12 : vector<512x1xf32> to vector<512x128xf32>
    %16 = arith.addf %14, %15 : vector<512x128xf32>
    %cst_6 = arith.constant 0.000000e+00 : f32
    %17 = vector.broadcast %cst_6 : f32 to vector<512x128xf32>
    %18 = arith.maximumf %16, %17 : vector<512x128xf32>
    %19 = arith.truncf %18 : vector<512x128xf32> to vector<512x128xbf16>
    %c512 = arith.constant 512 : index
    %c0_7 = arith.constant 0 : index
    %20 = vector.load %arg2[%c512, %c0_7] : memref<896x512xbf16, #tpu.memory_space<vmem>>, vector<256x512xbf16>
    %c512_8 = arith.constant 512 : index
    %c0_9 = arith.constant 0 : index
    %21 = vector.load %arg3[%c512_8, %c0_9] : memref<896x1xf32, #tpu.memory_space<vmem>>, vector<256x1xf32>
    %cst_10 = arith.constant dense<0.000000e+00> : vector<256x128xf32>
    %22 = tpu.matmul %20, %19, %cst_10 {dimension_numbers = #tpu.dot_dimension_numbers<[1], [0], [0], [1], [0, 0, 1, 1], [], []>} : vector<256x512xbf16>, vector<512x128xbf16>, vector<256x128xf32> -> vector<256x128xf32>
    %23 = vector.broadcast %21 : vector<256x1xf32> to vector<256x128xf32>
    %24 = arith.addf %22, %23 : vector<256x128xf32>
    %cst_11 = arith.constant 0.000000e+00 : f32
    %25 = vector.broadcast %cst_11 : f32 to vector<256x128xf32>
    %26 = arith.maximumf %24, %25 : vector<256x128xf32>
    %27 = arith.truncf %26 : vector<256x128xf32> to vector<256x128xbf16>
    %c768 = arith.constant 768 : index
    %c0_12 = arith.constant 0 : index
    %28 = vector.load %arg2[%c768, %c0_12] : memref<896x512xbf16, #tpu.memory_space<vmem>>, vector<64x256xbf16>
    %c768_13 = arith.constant 768 : index
    %c0_14 = arith.constant 0 : index
    %29 = vector.load %arg3[%c768_13, %c0_14] : memref<896x1xf32, #tpu.memory_space<vmem>>, vector<64x1xf32>
    %cst_15 = arith.constant dense<0.000000e+00> : vector<64x128xf32>
    %30 = tpu.matmul %28, %27, %cst_15 {dimension_numbers = #tpu.dot_dimension_numbers<[1], [0], [0], [1], [0, 0, 1, 1], [], []>} : vector<64x256xbf16>, vector<256x128xbf16>, vector<64x128xf32> -> vector<64x128xf32>
    %31 = vector.broadcast %29 : vector<64x1xf32> to vector<64x128xf32>
    %32 = arith.addf %30, %31 : vector<64x128xf32>
    %cst_16 = arith.constant 0.000000e+00 : f32
    %33 = vector.broadcast %cst_16 : f32 to vector<64x128xf32>
    %34 = arith.maximumf %32, %33 : vector<64x128xf32>
    %35 = arith.truncf %34 : vector<64x128xf32> to vector<64x128xbf16>
    %c832 = arith.constant 832 : index
    %c0_17 = arith.constant 0 : index
    %36 = vector.load %arg2[%c832, %c0_17] : memref<896x512xbf16, #tpu.memory_space<vmem>>, vector<32x64xbf16>
    %c832_18 = arith.constant 832 : index
    %c0_19 = arith.constant 0 : index
    %37 = vector.load %arg3[%c832_18, %c0_19] : memref<896x1xf32, #tpu.memory_space<vmem>>, vector<32x1xf32>
    %cst_20 = arith.constant dense<0.000000e+00> : vector<32x128xf32>
    %38 = tpu.matmul %36, %35, %cst_20 {dimension_numbers = #tpu.dot_dimension_numbers<[1], [0], [0], [1], [0, 0, 1, 1], [], []>} : vector<32x64xbf16>, vector<64x128xbf16>, vector<32x128xf32> -> vector<32x128xf32>
    %39 = vector.broadcast %37 : vector<32x1xf32> to vector<32x128xf32>
    %40 = arith.addf %38, %39 : vector<32x128xf32>
    %cst_21 = arith.constant 0.000000e+00 : f32
    %41 = vector.broadcast %cst_21 : f32 to vector<32x128xf32>
    %42 = arith.maximumf %40, %41 : vector<32x128xf32>
    %43 = arith.truncf %42 : vector<32x128xf32> to vector<32x128xbf16>
    %c864 = arith.constant 864 : index
    %c0_22 = arith.constant 0 : index
    %44 = vector.load %arg2[%c864, %c0_22] : memref<896x512xbf16, #tpu.memory_space<vmem>>, vector<16x32xbf16>
    %c864_23 = arith.constant 864 : index
    %c0_24 = arith.constant 0 : index
    %45 = vector.load %arg3[%c864_23, %c0_24] : memref<896x1xf32, #tpu.memory_space<vmem>>, vector<16x1xf32>
    %cst_25 = arith.constant dense<0.000000e+00> : vector<16x128xf32>
    %46 = tpu.matmul %44, %43, %cst_25 {dimension_numbers = #tpu.dot_dimension_numbers<[1], [0], [0], [1], [0, 0, 1, 1], [], []>} : vector<16x32xbf16>, vector<32x128xbf16>, vector<16x128xf32> -> vector<16x128xf32>
    %47 = vector.broadcast %45 : vector<16x1xf32> to vector<16x128xf32>
    %48 = arith.addf %46, %47 : vector<16x128xf32>
    %cst_26 = arith.constant 0.000000e+00 : f32
    %49 = vector.broadcast %cst_26 : f32 to vector<16x128xf32>
    %50 = arith.maximumf %48, %49 : vector<16x128xf32>
    %51 = arith.truncf %50 : vector<16x128xf32> to vector<16x128xbf16>
    %c880 = arith.constant 880 : index
    %c0_27 = arith.constant 0 : index
    %52 = vector.load %arg2[%c880, %c0_27] : memref<896x512xbf16, #tpu.memory_space<vmem>>, vector<1x16xbf16>
    %c880_28 = arith.constant 880 : index
    %c0_29 = arith.constant 0 : index
    %53 = vector.load %arg3[%c880_28, %c0_29] : memref<896x1xf32, #tpu.memory_space<vmem>>, vector<1x1xf32>
    %cst_30 = arith.constant dense<0.000000e+00> : vector<1x128xf32>
    %54 = tpu.matmul %52, %51, %cst_30 {dimension_numbers = #tpu.dot_dimension_numbers<[1], [0], [0], [1], [0, 0, 1, 1], [], []>} : vector<1x16xbf16>, vector<16x128xbf16>, vector<1x128xf32> -> vector<1x128xf32>
    %55 = vector.broadcast %53 : vector<1x1xf32> to vector<1x128xf32>
    %56 = arith.addf %54, %55 : vector<1x128xf32>
    %57 = math.absf %56 : vector<1x128xf32>
    %cst_31 = arith.constant 0.000000e+00 : f32
    %58 = vector.broadcast %cst_31 : f32 to vector<1x128xf32>
    %59 = arith.subf %58, %57 : vector<1x128xf32>
    %60 = math.exp %59 : vector<1x128xf32>
    %cst_32 = arith.constant 0.000000e+00 : f32
    %61 = vector.broadcast %cst_32 : f32 to vector<1x128xf32>
    %62 = arith.cmpf oge, %56, %61 : vector<1x128xf32>
    %cst_33 = arith.constant 1.000000e+00 : f32
    %63 = vector.broadcast %cst_33 : f32 to vector<1x128xf32>
    %64 = arith.select %62, %63, %60 : vector<1x128xi1>, vector<1x128xf32>
    %cst_34 = arith.constant 1.000000e+00 : f32
    %65 = vector.broadcast %cst_34 : f32 to vector<1x128xf32>
    %66 = arith.addf %65, %60 : vector<1x128xf32>
    %67 = arith.divf %64, %66 : vector<1x128xf32>
    %c0_35 = arith.constant 0 : index
    %c0_36 = arith.constant 0 : index
    %68 = vector.load %arg4[%c0_35, %c0_36] : memref<1x128xf32, #tpu.memory_space<vmem>>, vector<1x128xf32>
    tpu.vector_store %arg4[%c0_35, %c0_36], %67 {strides = array<i32>} : memref<1x128xf32, #tpu.memory_space<vmem>>, vector<1x128xf32>,
    return
  }
  func.func @transform_0(%arg0: i32) -> (i32, i32) {
    %c0_i32 = arith.constant 0 : i32
    %c0_i32_0 = arith.constant 0 : i32
    return %arg0, %c0_i32 : i32, i32
  }
  func.func @transform_1(%arg0: i32) -> (i32, i32) {
    %c0_i32 = arith.constant 0 : i32
    %c0_i32_0 = arith.constant 0 : i32
    %c0_i32_1 = arith.constant 0 : i32
    return %c0_i32, %c0_i32_0 : i32, i32
  }
  func.func @transform_2(%arg0: i32) -> (i32, i32) {
    %c0_i32 = arith.constant 0 : i32
    %c0_i32_0 = arith.constant 0 : i32
    %c0_i32_1 = arith.constant 0 : i32
    return %c0_i32, %c0_i32_0 : i32, i32
  }
  func.func @transform_3(%arg0: i32) -> (i32, i32) {
    %c0_i32 = arith.constant 0 : i32
    %c0_i32_0 = arith.constant 0 : i32
    return %c0_i32, %arg0 : i32, i32
  }
}

</mosaic_0001>

<bundles_post_ra>
// kernel: classification_nn_forward.1
= control target key start
LH: loop header
LB: loop body
LE: loop exit
PB: predicated region body
PF: predicated region fallthrough
CT: control target
= control target key end

     0   :  { %8 = vsyncpa [#allocation3], 0  ;;  %s3724_s12 = smov 0   ;;  %s4727_s0 = inlined_call_operand.vmem [shape: bf16[200,32], index: 0, kind: input, shape index: {}]   ;;  %s4728_s1 = inlined_call_operand.hbm [shape: bf16[896,512], index: 1, kind: input, shape index: {}]   ;;  %s4729_s2 = inlined_call_operand.vmem [shape: f32[896,1], index: 2, kind: input, shape index: {}]   ;;  %s4730_s3 = inlined_call_operand.vmem [shape: f32[1,256], index: 3, kind: output, shape index: {}]  }
   0x1 LB: > { %s3730_s13 = sadd.s32 4294967295, %s3696_s12   ;;  %p2897_p0 = scmp.ge.s32.totalorder %s3696_s12, 1  ;;  %s3696_s12 = sphi %s3724_s12, %s14_s12  }
   0x2   : > { %p113_p1 = scmp.lt.s32.totalorder %s3696_s12, 3  ;;  %s3698_s14 = smov [#allocation2]  }
   0x3   : > { %s125_s15 = sshll.u32 %s3698_s14, 4  ;;  %p3495_p3 = scmp.eq.s32.totalorder %s3730_s13, 0  ;;  %s126_s15 = int_to_ptr.vmem [resolvable:$true] %s125_s15 }
   0x4   : > { %p3734_p2 = pnand %p2897_p0, %p113_p1  ;;  %s3671_s17 = scalar_lea.vmem %s126_s15, 28672 }
   0x5   : > { %p3672_p7 = scmp.ne.s32.totalorder %s126_s15, %s3671_s17  ;;  %p3679_p10 = scmp.lt.s32.totalorder %s126_s15, %s126_s15 }
   0x6   : > { %p3491_p4 = pneg %p3734_p2  ;;  %p3680_p11 = scmp.lt.s32.totalorder %s3671_s17, %s3671_s17 }
   0x8   : > { %p3492_p5 = pnand %p3495_p3, %p3491_p4  ;;  %p3681_p12 = por %p3680_p11, %p3679_p10 }
   0xa   : > { %p3662_p6 = pneg %p3492_p5 }
   0xc   : > { %p3674_p8 = pnand %p3672_p7, %p3662_p6 }
   0xe   : > { %p3675_p9 = pneg %p3674_p8 }
  0x10   : > { %p3682_p13 = pnand %p3681_p12, %p3675_p9 }
  0x12   : > { %3685 = shalt.err (!%p3682_p13)
}
  0x13   : > { %s3699_s18 = smov 256   ;;  %s3700_s19 = smov 16  }
  0x14   : > { %3494 = dma.hbm_to_vmem [thread:$0]  (!%p3492_p5), %s4728_s1, 28672, %s126_s15, [#allocation3], %s3699_s18, %s3699_s18, %s3700_s19  }
  0x15   : > { %161 = sbr.rel (%p3734_p2) target bundleno = 1780 (0x6f4), region = 32 }
  0x1a   : > { %3691 = dma.done.wait (%p3495_p3), [#allocation3], 28672  }
  0x1b   : > { %3693 = vsyncadd (%p3495_p3), [#allocation3], 4294938624  ;;  %s2902_s22 = sshll.u32 %s3730_s13, 4  ;;  %v221_v0 = vlaneseq  ;;  %s2904_s23 = sshll.u32 %s3730_s13, 7  ;;  %v3701_v1 = vmov 0   ;;  %v430_v14 = vld [vmem:[%s4729_s2 + $0xf0] sm:$0xff] }
  0x1c   : > { %3512 = vset.pattern.permute.xlu1 %v3701_v1  ;;  %3511 = vset.pattern.permute.xlu0 %v3701_v1  ;;  %p192_p0 = scmp.lt.s32.totalorder %s2902_s22, 24  ;;  %v3756_v3 = vstv %s2904_s23  ;;  %v414_v15 = vld [vmem:[%s4729_s2 + $0x70] sm:$0xff]  ;;  %v431_v20 = vld [vmem:[%s4729_s2 + $0xf8] sm:$0xff]  ;;  %vm984_vm6 = vcmask 261120   ;;  %v428_v30 = vld [vmem:[%s4729_s2 + $0xe0] sm:$0xff]  ;;  %p201_p1 = scmp.lt.s32.totalorder %s3730_s13, 1 }
  0x1d   : > { %v3754_v2 = vshrl.u32 %v221_v0, 7  ;;  %616 = vperm.xlu0 %3511, %v430_v14   ;;  %536 = vperm.xlu1 %3512, %v414_v15   ;;  %v415_v21 = vld [vmem:[%s4729_s2 + $0x78] sm:$0xff]  ;;  %v429_v31 = vld [vmem:[%s4729_s2 + $0xe8] sm:$0xff]  ;;  %v412_v42 = vld [vmem:[%s4729_s2 + $0x60] sm:$0xff] }
  0x1e   : > { %s4843_s22 = smov (!%p192_p0, %s2902_s22), 24  ;;  %v413_v41 = vld [vmem:[%s4729_s2 + $0x68] sm:$0xff]  ;;  %v427_v48 = vld [vmem:[%s4729_s2 + $0xd8] sm:$0xff]  ;;  %v426_v49 = vld [vmem:[%s4729_s2 + $0xd0] sm:$0xff]  ;;  %s4845_s13 = smov (!%p201_p1, %s3730_s13), 1 }
  0x1f   : > { %v236_v4 = vadd.s32 112, %v3754_v2  ;;  %v237_v5 = vadd.s32 120, %v3754_v2  ;;  %v234_v6 = vadd.s32 96, %v3754_v2  ;;  %v235_v7 = vadd.s32 104, %v3754_v2  ;;  %s2903_s24 = sshll.u32 %s4843_s22, 2  ;;  %v411_v57 = vld [vmem:[%s4729_s2 + $0x58] sm:$0xff]  ;;  %s203_s29 = scalar_lea.vmem %s4730_s3, %s4845_s13 }
  0x20   : > { %v232_v8 = vadd.s32 80, %v3754_v2  ;;  %v233_v9 = vadd.s32 88, %v3754_v2  ;;  %s3767_s27 = scalar_lea.vmem %s4727_s0, %s2903_s24  ;;  %v230_v23 = vadd.s32 64, %v3754_v2  ;;  %v231_v29 = vadd.s32 72, %v3754_v2  ;;  %v410_v58 = vld [vmem:[%s4729_s2 + $0x50] sm:$0xff]  ;;  %v425_v0 = vld [vmem:[%s4729_s2 + $0xc8] sm:$0xff] }
  0x21   : > { %v254_v10 = vadd.s32 %v3756_v3, %v236_v4  ;;  %v255_v11 = vadd.s32 %v3756_v3, %v237_v5  ;;  %v252_v12 = vadd.s32 %v3756_v3, %v234_v6  ;;  %v253_v13 = vadd.s32 %v3756_v3, %v235_v7  ;;  %v219_v17 = vld [vmem:[%s3767_s27 + $0x38] sm:$0xf]  ;;  %v220_v18 = vld [vmem:[%s3767_s27 + $0x3c] sm:$0xf]  ;;  %v217_v25 = vld [vmem:[%s3767_s27 + $0x30] sm:$0xf]  ;;  %621 = vperm.xlu0 %3511, %v431_v20  }
  0x22   : > { %v250_v16 = vadd.s32 %v3756_v3, %v232_v8  ;;  %v251_v19 = vadd.s32 %v3756_v3, %v233_v9  ;;  %v218_v26 = vld [vmem:[%s3767_s27 + $0x34] sm:$0xf]  ;;  %541 = vperm.xlu1 %3512, %v415_v21   ;;  %v215_v36 = vld [vmem:[%s3767_s27 + $0x28] sm:$0xf]  ;;  %v216_v37 = vld [vmem:[%s3767_s27 + $0x2c] sm:$0xf]  ;;  %v248_v39 = vadd.s32 %v3756_v3, %v230_v23  ;;  %v249_v40 = vadd.s32 %v3756_v3, %v231_v29 }
  0x23   : > { %vm270_vm0 = vcmp.lt.s32.totalorder %v254_v10, 200  ;;  %vm271_vm1 = vcmp.lt.s32.totalorder %v255_v11, 200  ;;  %vm268_vm3 = vcmp.lt.s32.totalorder %v252_v12, 200  ;;  %vm269_vm4 = vcmp.lt.s32.totalorder %v253_v13, 200  ;;  %v213_v53 = vld [vmem:[%s3767_s27 + $0x20] sm:$0xf] }
  0x24   : > { %vm318_vm2 = vmpackc.low %vm270_vm0, %vm270_vm0  ;;  %vm266_vm8 = vcmp.lt.s32.totalorder %v250_v16, 200  ;;  %vm267_vm10 = vcmp.lt.s32.totalorder %v251_v19, 200  ;;  %v228_v45 = vadd.s32 48, %v3754_v2  ;;  %vm264_vm13 = vcmp.lt.s32.totalorder %v248_v39, 200  ;;  %v214_v54 = vld [vmem:[%s3767_s27 + $0x24] sm:$0xf] }
  0x25   : > { %vm319_vm5 = vmpackc.low %vm271_vm1, %vm271_vm1  ;;  %v334_v22 = vsel %vm318_vm2, %v219_v17, 0  ;;  %606 = vperm.xlu0 %3511, %v428_v30   ;;  %vm265_vm14 = vcmp.lt.s32.totalorder %v249_v40, 200  ;;  %v229_v47 = vadd.s32 56, %v3754_v2  ;;  %v226_v61 = vadd.s32 32, %v3754_v2  ;;  %v424_v1 = vld [vmem:[%s4729_s2 + $0xc0] sm:$0xff]  ;;  %v409_v12 = vld [vmem:[%s4729_s2 + $0x48] sm:$0xff] }
  0x26   : > { %v335_v24 = vsel %vm319_vm5, %v220_v18, 0  ;;  %vm316_vm7 = vmpackc.low %vm268_vm3, %vm268_vm3  ;;  %611 = vperm.xlu1 %3512, %v429_v31   ;;  %v246_v52 = vadd.s32 %v3756_v3, %v228_v45  ;;  %v227_v62 = vadd.s32 40, %v3754_v2  ;;  %v211_v5 = vld [vmem:[%s3767_s27 + $0x18] sm:$0xf]  ;;  %v3513_v7 = vld [vmem:[#allocation2] ss:$16 sps:$4 sm:$0xff]  }
  0x27   : > { %v2944_v27 = vcombine.low %v334_v22, %v335_v24  ;;  %vm317_vm9 = vmpackc.low %vm269_vm4, %vm269_vm4  ;;  %v332_v28 = vsel %vm316_vm7, %v217_v25, 0  ;;  %v247_v56 = vadd.s32 %v3756_v3, %v229_v47  ;;  %v212_v8 = vld [vmem:[%s3767_s27 + $0x1c] sm:$0xf]  ;;  %v244_v10 = vadd.s32 %v3756_v3, %v226_v61  ;;  %v408_v13 = vld [vmem:[%s4729_s2 + $0x40] sm:$0xff]  ;;  %3389 = vmatprep.mubr.msk.bf16.mxu0 %vm984_vm6, %v3513_v7 }
  0x28   : > { %v333_v32 = vsel %vm317_vm9, %v218_v26, 0  ;;  %vm3801_vm11 = vmpackc.low %vm266_vm8, %vm266_vm8  ;;  %vm262_vm1 = vcmp.lt.s32.totalorder %v246_v52, 200  ;;  %v245_v11 = vadd.s32 %v3756_v3, %v227_v62  ;;  %v224_v14 = vadd.s32 16, %v3754_v2  ;;  %v423_v17 = vld [vmem:[%s4729_s2 + $0xb8] sm:$0xff]  ;;  %v422_v20 = vld [vmem:[%s4729_s2 + $0xb0] sm:$0xff] }
  0x29   : > { %3479 = vmatprep.subr.msk.bf16.mxu0 %vm984_vm6, %v2944_v27  ;;  %v1103_v33 = vsel %vm984_vm6, %v2944_v27, 0  ;;  %v2943_v34 = vcombine.low %v332_v28, %v333_v32  ;;  %vm3807_vm12 = vmpackc.low %vm267_vm10, %vm267_vm10  ;;  %v330_v43 = vsel %vm3801_vm11, %v215_v36, 0  ;;  %526 = vperm.xlu0 %3511, %v412_v42   ;;  %vm263_vm2 = vcmp.lt.s32.totalorder %v247_v56, 200  ;;  %v209_v22 = vld [vmem:[%s3767_s27 + $0x10] sm:$0xf]  ;;  %v407_v28 = vld [vmem:[%s4729_s2 + $0x38] sm:$0xff] }
  0x2a   : > { %3374 = vmatpush3.bf16.xpose.msra.mxu0 %v1103_v33  ;;  %v331_v44 = vsel %vm3807_vm12, %v216_v37, 0  ;;  %531 = vperm.xlu1 %3512, %v413_v41   ;;  %vm3833_vm15 = vmpackc.low %vm264_vm13, %vm264_vm13  ;;  %vm260_vm5 = vcmp.lt.s32.totalorder %v244_v10, 200  ;;  %vm261_vm7 = vcmp.lt.s32.totalorder %v245_v11, 200  ;;  %v225_v19 = vadd.s32 24, %v3754_v2  ;;  %v210_v25 = vld [vmem:[%s3767_s27 + $0x14] sm:$0xf] }
  0x2b   : > { %3480 = vmatprep.subr.msk.bf16.mxu0 %vm984_vm6, %v2943_v34  ;;  %v1100_v46 = vsel %vm984_vm6, %v2943_v34, 0  ;;  %v2942_v50 = vcombine.low %v330_v43, %v331_v44  ;;  %vm3840_vm0 = vmpackc.low %vm265_vm14, %vm265_vm14  ;;  %v328_v59 = vsel %vm3833_vm15, %v213_v53, 0  ;;  %v242_v24 = vadd.s32 %v3756_v3, %v224_v14  ;;  %v406_v29 = vld [vmem:[%s4729_s2 + $0x30] sm:$0xff]  ;;  %v421_v32 = vld [vmem:[%s4729_s2 + $0xa8] sm:$0xff] }
  0x2c   : > { %v329_v60 = vsel %vm3840_vm0, %v214_v54, 0  ;;  %vm3866_vm3 = vmpackc.low %vm262_vm1, %vm262_vm1  ;;  %v243_v27 = vadd.s32 %v3756_v3, %v225_v19  ;;  %v223_v33 = vadd.s32 8, %v3754_v2  ;;  %v420_v35 = vld [vmem:[%s4729_s2 + $0xa0] sm:$0xff]  ;;  %v207_v37 = vld [vmem:[%s3767_s27 + $0x8] sm:$0xf]  ;;  %v240_v41 = vadd.s32 %v3756_v3, %v3754_v2 }
  0x2d   : > { %596 = vperm.xlu0 %3511, %v426_v49   ;;  %v1097_v63 = vsel %vm984_vm6, %v2942_v50, 0  ;;  %v2941_v4 = vcombine.low %v328_v59, %v329_v60  ;;  %vm3871_vm4 = vmpackc.low %vm263_vm2, %vm263_vm2  ;;  %v326_v15 = vsel %vm3866_vm3, %v211_v5, 0  ;;  %vm258_vm10 = vcmp.lt.s32.totalorder %v242_v24, 200  ;;  %v208_v39 = vld [vmem:[%s3767_s27 + $0xc] sm:$0xf]  ;;  %v404_v44 = vld [vmem:[%s4729_s2 + $0x20] sm:$0xff] }
  0x2e   : > { %601 = vperm.xlu1 %3512, %v427_v48   ;;  %v327_v16 = vsel %vm3871_vm4, %v212_v8, 0  ;;  %vm3899_vm8 = vmpackc.low %vm260_vm5, %vm260_vm5  ;;  %vm259_vm11 = vcmp.lt.s32.totalorder %v243_v27, 200  ;;  %v241_v42 = vadd.s32 %v3756_v3, %v223_v33  ;;  %v405_v43 = vld [vmem:[%s4729_s2 + $0x28] sm:$0xff]  ;;  %vm256_vm14 = vcmp.lt.s32.totalorder %v240_v41, 200  ;;  %v418_v47 = vld [vmem:[%s4729_s2 + $0x90] sm:$0xff] }
  0x2f   : > { %v1094_v18 = vsel %vm984_vm6, %v2941_v4, 0  ;;  %v2940_v21 = vcombine.low %v326_v15, %v327_v16  ;;  %vm3905_vm9 = vmpackc.low %vm261_vm7, %vm261_vm7  ;;  %v324_v30 = vsel %vm3899_vm8, %v209_v22, 0  ;;  %v206_v51 = vld [vmem:[%s3767_s27 + $0x4] sm:$0xf]  ;;  %v403_v52 = vld [vmem:[%s4729_s2 + $0x18] sm:$0xff]  ;;  %vm2647_vm2 = vcmask 523264  }
  0x30   : > { %v325_v31 = vsel %vm3905_vm9, %v210_v25, 0  ;;  %vm3930_vm12 = vmpackc.low %vm258_vm10, %vm258_vm10  ;;  %vm257_vm15 = vcmp.lt.s32.totalorder %v241_v42, 200  ;;  %v402_v53 = vld [vmem:[%s4729_s2 + $0x10] sm:$0xff]  ;;  %v401_v60 = vld [vmem:[%s4729_s2 + $0x8] sm:$0xff]  ;;  %vm3703_vm3 = vmmov 0   ;;  %vm2782_vm4 = vcmask 130048  }
  0x31   : > { %516 = vperm.xlu0 %3511, %v410_v58   ;;  %v1091_v34 = vsel %vm984_vm6, %v2940_v21, 0  ;;  %v2939_v36 = vcombine.low %v324_v30, %v325_v31  ;;  %vm3935_vm13 = vmpackc.low %vm259_vm11, %vm259_vm11  ;;  %v322_v45 = vsel %vm3930_vm12, %v207_v37, 0  ;;  %v416_v58 = vld [vmem:[%s4729_s2 + $0x80] sm:$0xff]  ;;  %v461_v7 = vld [vmem:[%s4729_s2 + $0x1e8] sm:$0xff] }
  0x32   : > { %3376 = vmatpush3.bf16.xpose.msra.mxu0 %v1100_v46  ;;  %521 = vperm.xlu1 %3512, %v411_v57   ;;  %v323_v2 = vsel %vm3935_vm13, %v208_v39, 0  ;;  %v419_v46 = vld [vmem:[%s4729_s2 + $0x98] sm:$0xff]  ;;  %vm3960_vm0 = vmpackc.low %vm256_vm14, %vm256_vm14  ;;  %v417_v57 = vld [vmem:[%s4729_s2 + $0x88] sm:$0xff] }
  0x33   : > { %3481 = vmatprep.subr.msk.bf16.mxu0 %vm984_vm6, %v2942_v50  ;;  %v1088_v3 = vsel %vm984_vm6, %v2939_v36, 0  ;;  %v2938_v48 = vcombine.low %v322_v45, %v323_v2  ;;  %v205_v50 = vld [vmem:[%s3767_s27] sm:$0xf]  ;;  %vm305_vm1 = vmpackc.low %vm257_vm15, %vm257_vm15  ;;  %v445_v9 = vld [vmem:[%s4729_s2 + $0x168] sm:$0xff] }
  0x34   : > { %v320_v54 = vsel %vm3960_vm0, %v205_v50, 0  ;;  %v321_v55 = vsel %vm305_vm1, %v206_v51, 0  ;;  %v400_v61 = vld [vmem:[%s4729_s2] sm:$0xff]  ;;  %v458_v14 = vld [vmem:[%s4729_s2 + $0x1d0] sm:$0xff]  ;;  %v443_v15 = vld [vmem:[%s4729_s2 + $0x158] sm:$0xff] }
  0x35   : > { %586 = vperm.xlu0 %3511, %v424_v1   ;;  %v1085_v56 = vsel %vm984_vm6, %v2938_v48, 0  ;;  %v2937_v59 = vcombine.low %v320_v54, %v321_v55  ;;  %v447_v1 = vld [vmem:[%s4729_s2 + $0x178] sm:$0xff]  ;;  %v3514_v5 = vld [vmem:[#allocation2 + $0x20] ss:$16 sps:$4 sm:$0xff]   ;;  %v453_v31 = vld [vmem:[%s4729_s2 + $0x1a8] sm:$0xff] }
  0x36   : > { %591 = vperm.xlu1 %3512, %v425_v0   ;;  %v462_v0 = vld [vmem:[%s4729_s2 + $0x1f0] sm:$0xff]  ;;  %v460_v8 = vld [vmem:[%s4729_s2 + $0x1e0] sm:$0xff]  ;;  %v455_v24 = vld [vmem:[%s4729_s2 + $0x1b8] sm:$0xff] }
  0x37   : > { %v1082_v62 = vsel %vm984_vm6, %v2937_v59, 0  ;;  %v3515_v6 = vld [vmem:[#allocation2 + $0x40] ss:$16 sps:$4 sm:$0xff]   ;;  %v439_v27 = vld [vmem:[%s4729_s2 + $0x138] sm:$0xff]  ;;  %v437_v33 = vld [vmem:[%s4729_s2 + $0x128] sm:$0xff] }
  0x38   : > { %v444_v10 = vld [vmem:[%s4729_s2 + $0x160] sm:$0xff]  ;;  %v442_v16 = vld [vmem:[%s4729_s2 + $0x150] sm:$0xff]  ;;  %v451_v37 = vld [vmem:[%s4729_s2 + $0x198] sm:$0xff] }
  0x39   : > { %506 = vperm.xlu0 %3511, %v408_v13   ;;  %v3516_v11 = vld [vmem:[#allocation2 + $0x60] ss:$16 sps:$4 sm:$0xff]   ;;  %v435_v39 = vld [vmem:[%s4729_s2 + $0x118] sm:$0xff]  ;;  %v433_v45 = vld [vmem:[%s4729_s2 + $0x108] sm:$0xff] }
  0x3a   : > { %3378 = vmatpush3.bf16.xpose.msra.mxu0 %v1097_v63  ;;  %511 = vperm.xlu1 %3512, %v409_v12   ;;  %v463_v63 = vld [vmem:[%s4729_s2 + $0x1f8] sm:$0xff]  ;;  %v3517_v13 = vld [vmem:[#allocation2 + $0x80] ss:$16 sps:$4 sm:$0xff]   ;;  %v1567_v55 = vld [vmem:[%s4729_s2 + $0x268] sm:$0xff] }
  0x3b   : > { %3482 = vmatprep.subr.msk.bf16.mxu0 %vm984_vm6, %v2941_v4  ;;  %v446_v4 = vld [vmem:[%s4729_s2 + $0x170] sm:$0xff]  ;;  %v459_v12 = vld [vmem:[%s4729_s2 + $0x1d8] sm:$0xff]  ;;  %v440_v22 = vld [vmem:[%s4729_s2 + $0x140] sm:$0xff] }
  0x3c   : > { %v3519_v19 = vld [vmem:[#allocation2 + $0xc0] ss:$16 sps:$4 sm:$0xff]   ;;  %v1569_v49 = vld [vmem:[%s4729_s2 + $0x278] sm:$0xff] }
  0x3d   : > { %576 = vperm.xlu0 %3511, %v422_v20   ;;  %v456_v20 = vld [vmem:[%s4729_s2 + $0x1c0] sm:$0xff]  ;;  %v454_v25 = vld [vmem:[%s4729_s2 + $0x1b0] sm:$0xff] }
  0x3e   : > { %581 = vperm.xlu1 %3512, %v423_v17   ;;  %v3518_v17 = vld [vmem:[#allocation2 + $0xa0] ss:$16 sps:$4 sm:$0xff]  }
  0x3f   : > { %v3520_v23 = vld [vmem:[#allocation2 + $0xe0] ss:$16 sps:$4 sm:$0xff]  }
  0x40   : > { %v3521_v26 = vld [vmem:[#allocation2 + $0x100] ss:$16 sps:$4 sm:$0xff]  }
  0x41   : > { %496 = vperm.xlu0 %3511, %v406_v29   ;;  %v3522_v29 = vld [vmem:[#allocation2 + $0x120] ss:$16 sps:$4 sm:$0xff]  }
  0x42   : > { %3380 = vmatpush3.bf16.xpose.msra.mxu0 %v1094_v18  ;;  %501 = vperm.xlu1 %3512, %v407_v28   ;;  %v457_v18 = vld [vmem:[%s4729_s2 + $0x1c8] sm:$0xff]  ;;  %v438_v28 = vld [vmem:[%s4729_s2 + $0x130] sm:$0xff]  ;;  %v432_v2 = vld [vmem:[%s4729_s2 + $0x100] sm:$0xff] }
  0x43   : > { %3483 = vmatprep.subr.msk.bf16.mxu0 %vm984_vm6, %v2940_v21  ;;  %v441_v21 = vld [vmem:[%s4729_s2 + $0x148] sm:$0xff]  ;;  %v3523_v30 = vld [vmem:[#allocation2 + $0x140] ss:$16 sps:$4 sm:$0xff]  }
  0x44   : > { %v450_v38 = vld [vmem:[%s4729_s2 + $0x190] sm:$0xff]  ;;  %v1582_v54 = vld [vmem:[%s4729_s2 + $0x2e0] sm:$0xff] }
  0x45   : > { %566 = vperm.xlu0 %3511, %v420_v35   ;;  %v3524_v35 = vld [vmem:[#allocation2 + $0x160] ss:$16 sps:$4 sm:$0xff]  }
  0x46   : > { %571 = vperm.xlu1 %3512, %v421_v32   ;;  %v452_v32 = vld [vmem:[%s4729_s2 + $0x1a0] sm:$0xff]  ;;  %v434_v40 = vld [vmem:[%s4729_s2 + $0x110] sm:$0xff] }
  0x47   : > { %v3526_v41 = vld [vmem:[#allocation2 + $0x1a0] ss:$16 sps:$4 sm:$0xff]  }
  0x48   : > { %v3527_v42 = vld [vmem:[#allocation2 + $0x1c0] ss:$16 sps:$4 sm:$0xff]  }
  0x49   : > { %486 = vperm.xlu0 %3511, %v404_v44   ;;  %v448_v44 = vld [vmem:[%s4729_s2 + $0x180] sm:$0xff]  ;;  %v1568_v50 = vld [vmem:[%s4729_s2 + $0x270] sm:$0xff] }
  0x4a   : > { %3382 = vmatpush3.bf16.xpose.msra.mxu0 %v1091_v34  ;;  %491 = vperm.xlu1 %3512, %v405_v43   ;;  %v436_v34 = vld [vmem:[%s4729_s2 + $0x120] sm:$0xff]  ;;  %v449_v43 = vld [vmem:[%s4729_s2 + $0x188] sm:$0xff] }
  0x4b   : > { %3484 = vmatprep.subr.msk.bf16.mxu0 %vm984_vm6, %v2939_v36  ;;  %v3525_v36 = vld [vmem:[#allocation2 + $0x180] ss:$16 sps:$4 sm:$0xff]  }
  0x4c   : > { %v3530_v51 = vld [vmem:[#allocation2 + $0x220] ss:$16 sps:$4 sm:$0xff]  }
  0x4d   : > { %556 = vperm.xlu0 %3511, %v418_v47   ;;  %v1585_v47 = vld [vmem:[%s4729_s2 + $0x2f8] sm:$0xff] }
  0x4e   : > { %561 = vperm.xlu1 %3512, %v419_v46   ;;  %v3529_v46 = vld [vmem:[#allocation2 + $0x200] ss:$16 sps:$4 sm:$0xff]  }
  0x51   : > { %476 = vperm.xlu0 %3511, %v402_v53   ;;  %v1583_v53 = vld [vmem:[%s4729_s2 + $0x2e8] sm:$0xff] }
  0x52   : > { %3384 = vmatpush3.bf16.xpose.msra.mxu0 %v1088_v3  ;;  %481 = vperm.xlu1 %3512, %v403_v52   ;;  %v3528_v3 = vld [vmem:[#allocation2 + $0x1e0] ss:$16 sps:$4 sm:$0xff]  }
  0x53   : > { %3485 = vmatprep.subr.msk.bf16.mxu0 %vm984_vm6, %v2938_v48  ;;  %v1584_v48 = vld [vmem:[%s4729_s2 + $0x2f0] sm:$0xff] }
  0x54   : > { %v3531_v52 = vld [vmem:[#allocation2 + $0x240] ss:$16 sps:$4 sm:$0xff]  }
  0x55   : > { %546 = vperm.xlu0 %3511, %v416_v58   ;;  %v3533_v58 = vld [vmem:[#allocation2 + $0x280] ss:$16 sps:$4 sm:$0xff]  }
  0x56   : > { %551 = vperm.xlu1 %3512, %v417_v57   ;;  %v3532_v57 = vld [vmem:[#allocation2 + $0x260] ss:$16 sps:$4 sm:$0xff]  }
  0x59   : > { %466 = vperm.xlu0 %3511, %v400_v61  }
  0x5a   : > { %3386 = vmatpush3.bf16.xpose.msra.mxu0 %v1085_v56  ;;  %471 = vperm.xlu1 %3512, %v401_v60   ;;  %v1566_v56 = vld [vmem:[%s4729_s2 + $0x260] sm:$0xff]  ;;  %v1580_v60 = vld [vmem:[%s4729_s2 + $0x2d0] sm:$0xff] }
  0x5b   : > { %3486 = vmatprep.subr.msk.bf16.mxu0 %vm984_vm6, %v2937_v59  ;;  %v1581_v59 = vld [vmem:[%s4729_s2 + $0x2d8] sm:$0xff] }
  0x5d   : > { %776 = vperm.xlu0 %3511, %v462_v0  }
  0x5e   : > { %781 = vperm.xlu1 %3512, %v463_v63   ;;  %v1564_v63 = vld [vmem:[%s4729_s2 + $0x250] sm:$0xff] }
  0x61   : > { %696 = vperm.xlu0 %3511, %v446_v4   ;;  %v3535_v4 = vld [vmem:[#allocation2 + $0x2c0] ss:$16 sps:$4 sm:$0xff]  }
  0x62   : > { %3388 = vmatpush3.bf16.xpose.msra.mxu0 %v1082_v62  ;;  %701 = vperm.xlu1 %3512, %v447_v1   ;;  %v1565_v62 = vld [vmem:[%s4729_s2 + $0x258] sm:$0xff]  ;;  %v3534_v1 = vld [vmem:[#allocation2 + $0x2a0] ss:$16 sps:$4 sm:$0xff]  }
  0x65   : > { %766 = vperm.xlu0 %3511, %v460_v8  }
  0x66   : > { %771 = vperm.xlu1 %3512, %v461_v7  }
  0x69   : > { %3390 = vmatmul.mubr.msk.bf16.vlgmr.msra.gmra.mxu0 %vm984_vm6, %v3514_v5  ;;  %686 = vperm.xlu0 %3511, %v444_v10   ;;  %v1579_v5 = vld [vmem:[%s4729_s2 + $0x2c8] sm:$0xff]  ;;  %v1562_v10 = vld [vmem:[%s4729_s2 + $0x240] sm:$0xff] }
  0x6a   : > { %3393 = vmatprep.mubr.msk.bf16.mxu0 %vm984_vm6, %v3515_v6  ;;  %691 = vperm.xlu1 %3512, %v445_v9   ;;  %v1578_v6 = vld [vmem:[%s4729_s2 + $0x2c0] sm:$0xff]  ;;  %v1563_v9 = vld [vmem:[%s4729_s2 + $0x248] sm:$0xff] }
  0x6d   : > { %756 = vperm.xlu0 %3511, %v458_v14   ;;  %v1577_v14 = vld [vmem:[%s4729_s2 + $0x2b8] sm:$0xff] }
  0x6e   : > { %761 = vperm.xlu1 %3512, %v459_v12   ;;  %v3537_v12 = vld [vmem:[#allocation2 + $0x300] ss:$16 sps:$4 sm:$0xff]  }
  0x71   : > { %3394 = vmatmul.mubr.msk.bf16.gmra.mxu0 %vm984_vm6, %v3516_v11  ;;  %676 = vperm.xlu0 %3511, %v442_v16   ;;  %v3536_v11 = vld [vmem:[#allocation2 + $0x2e0] ss:$16 sps:$4 sm:$0xff]  }
  0x72   : > { %3397 = vmatprep.mubr.msk.bf16.mxu0 %vm984_vm6, %v3517_v13  ;;  %681 = vperm.xlu1 %3512, %v443_v15   ;;  %v1576_v15 = vld [vmem:[%s4729_s2 + $0x2b0] sm:$0xff] }
  0x75   : > { %746 = vperm.xlu0 %3511, %v456_v20   ;;  %v3538_v20 = vld [vmem:[#allocation2 + $0x320] ss:$16 sps:$4 sm:$0xff]  }
  0x76   : > { %751 = vperm.xlu1 %3512, %v457_v18   ;;  %v1560_v18 = vld [vmem:[%s4729_s2 + $0x230] sm:$0xff] }
  0x79   : > { %3398 = vmatmul.mubr.msk.bf16.gmra.mxu0 %vm984_vm6, %v3518_v17  ;;  %666 = vperm.xlu0 %3511, %v440_v22   ;;  %v1561_v17 = vld [vmem:[%s4729_s2 + $0x238] sm:$0xff] }
  0x7a   : > { %3401 = vmatprep.mubr.msk.bf16.mxu0 %vm984_vm6, %v3519_v19  ;;  %671 = vperm.xlu1 %3512, %v441_v21   ;;  %v3539_v21 = vld [vmem:[#allocation2 + $0x340] ss:$16 sps:$4 sm:$0xff]  }
  0x7d   : > { %736 = vperm.xlu0 %3511, %v454_v25  }
  0x7e   : > { %741 = vperm.xlu1 %3512, %v455_v24   ;;  %v1574_v24 = vld [vmem:[%s4729_s2 + $0x2a0] sm:$0xff] }
  0x81   : > { %3402 = vmatmul.mubr.msk.bf16.gmra.mxu0 %vm984_vm6, %v3520_v23  ;;  %656 = vperm.xlu0 %3511, %v438_v28   ;;  %v1575_v23 = vld [vmem:[%s4729_s2 + $0x2a8] sm:$0xff] }
  0x82   : > { %3405 = vmatprep.mubr.msk.bf16.mxu0 %vm984_vm6, %v3521_v26  ;;  %661 = vperm.xlu1 %3512, %v439_v27   ;;  %v1559_v26 = vld [vmem:[%s4729_s2 + $0x228] sm:$0xff]  ;;  %v1558_v27 = vld [vmem:[%s4729_s2 + $0x220] sm:$0xff] }
  0x85   : > { %726 = vperm.xlu0 %3511, %v452_v32   ;;  %v1572_v32 = vld [vmem:[%s4729_s2 + $0x290] sm:$0xff] }
  0x86   : > { %731 = vperm.xlu1 %3512, %v453_v31   ;;  %v1573_v31 = vld [vmem:[%s4729_s2 + $0x298] sm:$0xff] }
  0x89   : > { %3406 = vmatmul.mubr.msk.bf16.gmra.mxu0 %vm984_vm6, %v3522_v29  ;;  %646 = vperm.xlu0 %3511, %v436_v34   ;;  %v3540_v29 = vld [vmem:[#allocation2 + $0x360] ss:$16 sps:$4 sm:$0xff]  }
  0x8a   : > { %3409 = vmatprep.mubr.msk.bf16.mxu0 %vm984_vm6, %v3523_v30  ;;  %651 = vperm.xlu1 %3512, %v437_v33   ;;  %v3541_v30 = vld [vmem:[#allocation2 + $0x380] ss:$16 sps:$4 sm:$0xff]  }
  0x8d   : > { %716 = vperm.xlu0 %3511, %v450_v38   ;;  %v3543_v38 = vld [vmem:[#allocation2 + $0x3c0] ss:$16 sps:$4 sm:$0xff]  }
  0x8e   : > { %721 = vperm.xlu1 %3512, %v451_v37   ;;  %v3542_v37 = vld [vmem:[#allocation2 + $0x3a0] ss:$16 sps:$4 sm:$0xff]  }
  0x91   : > { %3410 = vmatmul.mubr.msk.bf16.gmra.mxu0 %vm984_vm6, %v3524_v35  ;;  %636 = vperm.xlu0 %3511, %v434_v40   ;;  %v1557_v35 = vld [vmem:[%s4729_s2 + $0x218] sm:$0xff]  ;;  %v1571_v40 = vld [vmem:[%s4729_s2 + $0x288] sm:$0xff] }
  0x92   : > { %3413 = vmatprep.mubr.msk.bf16.mxu0 %vm984_vm6, %v3525_v36  ;;  %641 = vperm.xlu1 %3512, %v435_v39   ;;  %v1556_v36 = vld [vmem:[%s4729_s2 + $0x210] sm:$0xff] }
  0x95   : > { %706 = vperm.xlu0 %3511, %v448_v44   ;;  %v1554_v44 = vld [vmem:[%s4729_s2 + $0x200] sm:$0xff] }
  0x96   : > { %711 = vperm.xlu1 %3512, %v449_v43   ;;  %v1555_v43 = vld [vmem:[%s4729_s2 + $0x208] sm:$0xff] }
  0x98   : > { %v4136_v61 = vpop.permute.xlu0 %616  ;;  %v4144_v0 = vpop.permute.xlu1 %536 }
  0x99   : > { %3414 = vmatmul.mubr.msk.bf16.gmra.mxu0 %vm984_vm6, %v3526_v41  ;;  %626 = vperm.xlu0 %3511, %v432_v2   ;;  %v1570_v41 = vld [vmem:[%s4729_s2 + $0x280] sm:$0xff] }
  0x9a   : > { %3417 = vmatprep.mubr.msk.bf16.mxu0 %vm984_vm6, %v3527_v42  ;;  %631 = vperm.xlu1 %3512, %v433_v45   ;;  %v3544_v2 = vld [vmem:[#allocation2 + $0x3e0] ss:$16 sps:$4 sm:$0xff]  }
  0x9c   : > { %v4152_v7 = vpop.permute.xlu0 %621 }
  0x9d   : > { %1738 = vperm.xlu0 %3511, %v1584_v48   ;;  %v4156_v8 = vpop.permute.xlu1 %541 }
  0x9e   : > { %1743 = vperm.xlu1 %3512, %v1585_v47   ;;  %v2450_v47 = vld [vmem:[%s4729_s2 + $0x330] sm:$0xff] }
  0xa0   : > { %v4164_v13 = vpop.permute.xlu0 %606 }
  0xa1   : > { %3418 = vmatmul.mubr.msk.bf16.gmra.mxu0 %vm984_vm6, %v3528_v3  ;;  %1658 = vperm.xlu0 %3511, %v1568_v50   ;;  %v4172_v16 = vpop.permute.xlu1 %611  ;;  %v2448_v50 = vld [vmem:[%s4729_s2 + $0x320] sm:$0xff] }
  0xa2   : > { %3421 = vmatprep.mubr.msk.bf16.mxu0 %vm984_vm6, %v3529_v46  ;;  %1663 = vperm.xlu1 %3512, %v1569_v49   ;;  %v2451_v46 = vld [vmem:[%s4729_s2 + $0x338] sm:$0xff]  ;;  %v2449_v49 = vld [vmem:[%s4729_s2 + $0x328] sm:$0xff] }
  0xa4   : > { %v4182_v19 = vpop.permute.xlu0 %526 }
  0xa5   : > { %1728 = vperm.xlu0 %3511, %v1582_v54   ;;  %v4184_v22 = vpop.permute.xlu1 %531 }
  0xa6   : > { %1733 = vperm.xlu1 %3512, %v1583_v53   ;;  %v2446_v53 = vld [vmem:[%s4729_s2 + $0x310] sm:$0xff] }
  0xa8   : > { %v4194_v25 = vpop.permute.xlu0 %596 }
  0xa9   : > { %3422 = vmatmul.mubr.msk.bf16.gmra.mxu0 %vm984_vm6, %v3530_v51  ;;  %1648 = vperm.xlu0 %3511, %v1566_v56   ;;  %v4202_v28 = vpop.permute.xlu1 %601  ;;  %v2445_v56 = vld [vmem:[%s4729_s2 + $0x308] sm:$0xff] }
  0xaa   : > { %3425 = vmatprep.mubr.msk.bf16.mxu0 %vm984_vm6, %v3531_v52  ;;  %1653 = vperm.xlu1 %3512, %v1567_v55   ;;  %v2447_v52 = vld [vmem:[%s4729_s2 + $0x318] sm:$0xff] }
  0xac   : > { %v4210_v33 = vpop.permute.xlu0 %516 }
  0xad   : > { %1718 = vperm.xlu0 %3511, %v1580_v60   ;;  %v4214_v34 = vpop.permute.xlu1 %521  ;;  %v2615_v60 = vld [vmem:[%s4729_s2 + $0x350] sm:$0xff] }
  0xae   : > { %1723 = vperm.xlu1 %3512, %v1581_v59   ;;  %v2616_v59 = vld [vmem:[%s4729_s2 + $0x358] sm:$0xff] }
  0xb0   : > { %v4222_v39 = vpop.permute.xlu0 %586 }
  0xb1   : > { %3426 = vmatmul.mubr.msk.bf16.gmra.mxu0 %vm984_vm6, %v3532_v57  ;;  %1638 = vperm.xlu0 %3511, %v1564_v63   ;;  %v4230_v42 = vpop.permute.xlu1 %591  ;;  %v2444_v57 = vld [vmem:[%s4729_s2 + $0x300] sm:$0xff]  ;;  %v2614_v63 = vld [vmem:[%s4729_s2 + $0x348] sm:$0xff] }
  0xb2   : > { %3429 = vmatprep.mubr.msk.bf16.mxu0 %vm984_vm6, %v3533_v58  ;;  %1643 = vperm.xlu1 %3512, %v1565_v62  }
  0xb4   : > { %v4240_v45 = vpop.permute.xlu0 %506 }
  0xb5   : > { %1708 = vperm.xlu0 %3511, %v1578_v6   ;;  %v4242_v3 = vpop.permute.xlu1 %511  ;;  %v2712_v6 = vld [vmem:[%s4729_s2 + $0x368] sm:$0xff] }
  0xb6   : > { %1713 = vperm.xlu1 %3512, %v1579_v5  }
  0xb8   : > { %v4251_v48 = vpop.permute.xlu0 %576 }
  0xb9   : > { %3430 = vmatmul.mubr.msk.bf16.gmra.mxu0 %vm984_vm6, %v3534_v1  ;;  %1628 = vperm.xlu0 %3511, %v1562_v10   ;;  %v4259_v51 = vpop.permute.xlu1 %581  ;;  %v2613_v1 = vld [vmem:[%s4729_s2 + $0x340] sm:$0xff] }
  0xba   : > { %3433 = vmatprep.mubr.msk.bf16.mxu0 %vm984_vm6, %v3535_v4  ;;  %1633 = vperm.xlu1 %3512, %v1563_v9   ;;  %v2711_v9 = vld [vmem:[%s4729_s2 + $0x360] sm:$0xff] }
  0xbc   : > { %v4267_v54 = vpop.permute.xlu0 %496 }
  0xbd   : > { %1698 = vperm.xlu0 %3511, %v1576_v15   ;;  %v4269_v55 = vpop.permute.xlu1 %501 }
  0xbe   : > { %1703 = vperm.xlu1 %3512, %v1577_v14  }
  0xc0   : > { %v4277_v58 = vpop.permute.xlu0 %566 }
  0xc1   : > { %3434 = vmatmul.mubr.msk.bf16.gmra.mxu0 %vm984_vm6, %v3536_v11  ;;  %1618 = vperm.xlu0 %3511, %v1560_v18   ;;  %v4285_v62 = vpop.permute.xlu1 %571  ;;  %v2776_v11 = vld [vmem:[%s4729_s2 + $0x370] sm:$0x1] }
  0xc2   : > { %3437 = vmatprep.mubr.msk.bf16.mxu0 %vm984_vm6, %v3537_v12  ;;  %1623 = vperm.xlu1 %3512, %v1561_v17  }
  0xc4   : > { %v487_v4 = vpop.permute.xlu0 %486 }
  0xc5   : > { %1688 = vperm.xlu0 %3511, %v1574_v24   ;;  %v492_v5 = vpop.permute.xlu1 %491 }
  0xc6   : > { %1693 = vperm.xlu1 %3512, %v1575_v23  }
  0xc8   : > { %v4299_v10 = vpop.permute.xlu0 %556 }
  0xc9   : > { %3438 = vmatmul.mubr.msk.bf16.gmra.mxu0 %vm984_vm6, %v3538_v20  ;;  %1608 = vperm.xlu0 %3511, %v1558_v27   ;;  %v4304_v12 = vpop.permute.xlu1 %561  ;;  %v3547_v20 = vld [vmem:[#allocation2 + $0x404] ss:$16 sps:$4 sm:$0xff]  }
  0xca   : > { %3441 = vmatprep.mubr.msk.bf16.mxu0 %vm984_vm6, %v3539_v21  ;;  %1613 = vperm.xlu1 %3512, %v1559_v26  }
  0xcb   : > { %2098 = vmatprep.mubr.bf16.mxu1 %v3547_v20 }
  0xcc   : > { %v477_v14 = vpop.permute.xlu0 %476 }
  0xcd   : > { %1678 = vperm.xlu0 %3511, %v1572_v32   ;;  %v482_v15 = vpop.permute.xlu1 %481 }
  0xce   : > { %1683 = vperm.xlu1 %3512, %v1573_v31  }
  0xd0   : > { %v4306_v17 = vpop.permute.xlu0 %546 }
  0xd1   : > { %3442 = vmatmul.mubr.msk.bf16.gmra.mxu0 %vm984_vm6, %v3540_v29  ;;  %1598 = vperm.xlu0 %3511, %v1556_v36   ;;  %v4308_v18 = vpop.permute.xlu1 %551 }
  0xd2   : > { %3445 = vmatprep.mubr.msk.bf16.mxu0 %vm984_vm6, %v3541_v30  ;;  %1603 = vperm.xlu1 %3512, %v1557_v35  }
  0xd4   : > { %v467_v21 = vpop.permute.xlu0 %466 }
  0xd5   : > { %1668 = vperm.xlu0 %3511, %v1570_v41   ;;  %v472_v23 = vpop.permute.xlu1 %471 }
  0xd6   : > { %1673 = vperm.xlu1 %3512, %v1571_v40  }
  0xd8   : > { %v4310_v24 = vpop.permute.xlu0 %776 }
  0xd9   : > { %3446 = vmatmul.mubr.msk.bf16.gmra.mxu0 %vm984_vm6, %v3542_v37  ;;  %1588 = vperm.xlu0 %3511, %v1554_v44   ;;  %4754 = vst [vmem:[#allocation5_spill] sm:$0xff] %v4310_v24  ;;  %v4312_v26 = vpop.permute.xlu1 %781 }
  0xda   : > { %3449 = vmatprep.mubr.msk.bf16.mxu0 %vm984_vm6, %v3543_v38  ;;  %1593 = vperm.xlu1 %3512, %v1555_v43   ;;  %4755 = vst [vmem:[#allocation6_spill] sm:$0xff] %v4312_v26 }
  0xdc   : > { %v4314_v27 = vpop.permute.xlu0 %696 }
  0xdd   : > { %2484 = vperm.xlu0 %3511, %v2450_v47   ;;  %4756 = vst [vmem:[#allocation7_spill] sm:$0xff] %v4314_v27  ;;  %v4316_v29 = vpop.permute.xlu1 %701 }
  0xde   : > { %2489 = vperm.xlu1 %3512, %v2451_v46   ;;  %4757 = vst [vmem:[#allocation8_spill] sm:$0xff] %v4316_v29 }
  0xe0   : > { %v4318_v30 = vpop.permute.xlu0 %766 }
  0xe1   : > { %3450 = vmatmul.mubr.msk.bf16.gmra.mxu0 %vm984_vm6, %v3544_v2  ;;  %2474 = vperm.xlu0 %3511, %v2448_v50   ;;  %4758 = vst [vmem:[#allocation9_spill] sm:$0xff] %v4318_v30  ;;  %v4320_v31 = vpop.permute.xlu1 %771 }
  0xe2   : > { %2479 = vperm.xlu1 %3512, %v2449_v49   ;;  %4759 = vst [vmem:[#allocation10_spill] sm:$0xff] %v4320_v31 }
  0xe4   : > { %v4322_v32 = vpop.permute.xlu0 %686 }
  0xe5   : > { %2464 = vperm.xlu0 %3511, %v2446_v53   ;;  %4760 = vst [vmem:[#allocation11_spill] sm:$0xff] %v4322_v32  ;;  %v4324_v35 = vpop.permute.xlu1 %691 }
  0xe6   : > { %2469 = vperm.xlu1 %3512, %v2447_v52   ;;  %4761 = vst [vmem:[#allocation12_spill] sm:$0xff] %v4324_v35 }
  0xe8   : > { %v4326_v37 = vpop.permute.xlu0 %756 }
  0xe9   : > { %2454 = vperm.xlu0 %3511, %v2444_v57   ;;  %4762 = vst [vmem:[#allocation13_spill] sm:$0xff] %v4326_v37  ;;  %v4328_v41 = vpop.permute.xlu1 %761 }
  0xea   : > { %2459 = vperm.xlu1 %3512, %v2445_v56   ;;  %4763 = vst [vmem:[#allocation14_spill] sm:$0xff] %v4328_v41 }
  0xec   : > { %v4330_v52 = vpop.permute.xlu0 %676 }
  0xed   : > { %2629 = vperm.xlu0 %3511, %v2615_v60   ;;  %4764 = vst [vmem:[#allocation15_spill] sm:$0xff] %v4330_v52  ;;  %v4334_v60 = vpop.permute.xlu1 %681 }
  0xee   : > { %2634 = vperm.xlu1 %3512, %v2616_v59   ;;  %4766 = vst [vmem:[#allocation17_spill] sm:$0xff] %v4334_v60 }
  0xf1   : > { %2619 = vperm.xlu0 %3511, %v2613_v1  }
  0xf2   : > { %2624 = vperm.xlu1 %3512, %v2614_v63  }
  0xf5   : > { %2715 = vperm.xlu0 %3511, %v2711_v9  }
  0xf6   : > { %2720 = vperm.xlu1 %3512, %v2712_v6  }
  0xf9   : > { %2779 = vperm.xlu0 %3511, %v2776_v11  }
 0x129   : > { %v3391_v36 = vpop.f32.mrf.mxu0 }
 0x12a   : > { %v1148_v40 = vadd.f32 %v3391_v36, %v477_v14 }
 0x12b   : > { %v1139_v38 = vpop.f32.mrf.mxu0 }
 0x12c   : > { %v1140_v44 = vadd.f32 %v1139_v38, %v467_v21  ;;  %v1396_v47 = vmax.f32 %v1148_v40, 0.0  ;;  %v4342_v38 = vpop.permute.xlu1 %751 }
 0x12d   : > { %v3392_v43 = vpop.f32.mrf.mxu0  ;;  %4769 = vst [vmem:[#allocation20_spill] sm:$0xff] %v4342_v38 }
 0x12e   : > { %v1151_v2 = vadd.f32 %v3392_v43, %v482_v15  ;;  %v1394_v56 = vmax.f32 %v1140_v44, 0.0  ;;  %v4340_v15 = vpop.permute.xlu0 %746 }
 0x12f   : > { %v1142_v46 = vpop.f32.mrf.mxu0  ;;  %4768 = vst [vmem:[#allocation19_spill] sm:$0xff] %v4340_v15 }
 0x130   : > { %v1397_v49 = vmax.f32 %v1151_v2, 0.0  ;;  %v1143_v50 = vadd.f32 %v1142_v46, %v472_v23 }
 0x131   : > { %v3395_v53 = vpop.f32.mrf.mxu0 }
 0x132   : > { %v4332_v57 = vpack.c.bf16 %v1397_v49, %v1396_v47  ;;  %v1395_v59 = vmax.f32 %v1143_v50, 0.0  ;;  %v1164_v6 = vadd.f32 %v3395_v53, %v4267_v54  ;;  %v4354_v47 = vpop.permute.xlu1 %671 }
 0x133   : > { %v1155_v63 = vpop.f32.mrf.mxu0  ;;  %4772 = vst [vmem:[#allocation23_spill] sm:$0xff] %v4354_v47 }
 0x134   : > { %4765 = vst [vmem:[#allocation16_spill] sm:$0xff] %v4332_v57  ;;  %v4336_v1 = vpack.c.bf16 %v1395_v59, %v1394_v56  ;;  %v1156_v11 = vadd.f32 %v1155_v63, %v487_v4  ;;  %v1400_v21 = vmax.f32 %v1164_v6, 0.0  ;;  %v4352_v4 = vpop.permute.xlu0 %666 }
 0x135   : > { %v3396_v9 = vpop.f32.mrf.mxu0  ;;  %4771 = vst [vmem:[#allocation22_spill] sm:$0xff] %v4352_v4 }
 0x136   : > { %4767 = vst [vmem:[#allocation18_spill] sm:$0xff] %v4336_v1  ;;  %v1167_v14 = vadd.f32 %v3396_v9, %v4269_v55  ;;  %v1398_v43 = vmax.f32 %v1156_v11, 0.0  ;;  %v4360_v56 = vpop.permute.xlu1 %741 }
 0x137   : > { %v1158_v20 = vpop.f32.mrf.mxu0  ;;  %4774 = vst [vmem:[#allocation25_spill] sm:$0xff] %v4360_v56 }
 0x138   : > { %v1401_v23 = vmax.f32 %v1167_v14, 0.0  ;;  %v1159_v36 = vadd.f32 %v1158_v20, %v492_v5  ;;  %v4358_v50 = vpop.permute.xlu0 %736 }
 0x139   : > { %v4344_v40 = vpop.f32.mrf.mxu0  ;;  %4773 = vst [vmem:[#allocation24_spill] sm:$0xff] %v4358_v50 }
 0x13a   : > { %v4346_v44 = vpack.c.bf16 %v1401_v23, %v1400_v21  ;;  %v1399_v2 = vmax.f32 %v1159_v36, 0.0  ;;  %v4366_v11 = vpop.permute.xlu1 %661 }
 0x13b   : > { %v4348_v46 = vpop.f32.mrf.mxu0 }
 0x13c   : > { %v4350_v54 = vpack.c.bf16 %v1399_v2, %v1398_v43  ;;  %v4362_v6 = vpop.permute.xlu0 %656 }
 0x13d   : > { %v3400_v55 = vpop.f32.mrf.mxu0 }
 0x13e   : > { %4770 = vst [vmem:[#allocation21_spill] sm:$0xff] %v4350_v54  ;;  %v4376_v36 = vpop.permute.xlu1 %731 }
 0x13f   : > { %v4356_v49 = vpop.f32.mrf.mxu0  ;;  %4777 = vst [vmem:[#allocation28_spill] sm:$0xff] %v4376_v36 }
 0x140   : > { %v4372_v21 = vpop.permute.xlu0 %726 }
 0x141   : > { %v3403_v5 = vpop.f32.mrf.mxu0  ;;  %4776 = vst [vmem:[#allocation27_spill] sm:$0xff] %v4372_v21 }
 0x142   : > { %v4384_v56 = vpop.permute.xlu1 %651  ;;  %v1196_v30 = vadd.f32 %v3403_v5, %v4144_v0 }
 0x143   : > { %v1187_v53 = vpop.f32.mrf.mxu0 }
 0x144   : > { %v4382_v50 = vpop.permute.xlu0 %646  ;;  %v1408_v0 = vmax.f32 %v1196_v30, 0.0 }
 0x145   : > { %v3404_v59 = vpop.f32.mrf.mxu0 }
 0x146   : > { %v4390_v21 = vpop.permute.xlu1 %721  ;;  %v1199_v41 = vadd.f32 %v3404_v59, %v4156_v8 }
 0x147   : > { %v1190_v63 = vpop.f32.mrf.mxu0  ;;  %4779 = vst [vmem:[#allocation30_spill] sm:$0xff] %v4390_v21 }
 0x148   : > { %v4388_v52 = vpop.permute.xlu0 %716  ;;  %v1409_v21 = vmax.f32 %v1199_v41, 0.0  ;;  %v1191_v1 = vadd.f32 %v1190_v63, %v4184_v22 }
 0x149   : > { %v4364_v9 = vpop.f32.mrf.mxu0  ;;  %4778 = vst [vmem:[#allocation29_spill] sm:$0xff] %v4388_v52 }
 0x14a   : > { %v642_v31 = vpop.permute.xlu1 %641  ;;  %v1407_v5 = vmax.f32 %v1191_v1, 0.0 }
 0x14b   : > { %v4368_v14 = vpop.f32.mrf.mxu0 }
 0x14c   : > { %4775 = vst [vmem:[#allocation26_spill] sm:$0xff] %v4368_v14  ;;  %v637_v36 = vpop.permute.xlu0 %636 }
 0x14d   : > { %v4370_v20 = vpop.f32.mrf.mxu0 }
 0x14f   : > { %v4374_v23 = vpop.f32.mrf.mxu0 }
 0x150   : > { %v4397_v29 = vpop.permute.xlu0 %706 }
 0x151   : > { %v4378_v43 = vpop.f32.mrf.mxu0 }
 0x153   : > { %v4380_v2 = vpop.f32.mrf.mxu0 }
 0x154   : > { %v627_v30 = vpop.permute.xlu0 %626 }
 0x155   : > { %v3412_v4 = vpop.f32.mrf.mxu0 }
 0x156   : > { %v1231_v63 = vadd.f32 %v3412_v4, %v4259_v51 }
 0x157   : > { %v4386_v47 = vpop.f32.mrf.mxu0 }
 0x159   : > { %v3415_v15 = vpop.f32.mrf.mxu0 }
 0x15b   : > { %v1235_v38 = vpop.f32.mrf.mxu0 }
 0x15d   : > { %v3416_v60 = vpop.f32.mrf.mxu0 }
 0x15e   : > { %v1247_v57 = vadd.f32 %v3416_v60, %v4202_v28 }
 0x15f   : > { %v1238_v37 = vpop.f32.mrf.mxu0 }
 0x160   : > { %v1421_v28 = vmax.f32 %v1247_v57, 0.0 }
 0x161   : > { %v3419_v32 = vpop.f32.mrf.mxu0 }
 0x162   : > { %v1260_v26 = vadd.f32 %v3419_v32, %v4136_v61  ;;  %v4402_v61 = vpop.permute.xlu1 %711  ;;  %v1188_v32 = vadd.f32 %v1187_v53, %v4182_v19  ;;  %v1180_v19 = vadd.f32 %v4344_v40, %v4210_v33 }
 0x163   : > { %v1251_v35 = vpop.f32.mrf.mxu0 }
 0x164   : > { %v1252_v24 = vadd.f32 %v1251_v35, %v4164_v13  ;;  %v1424_v14 = vmax.f32 %v1260_v26, 0.0  ;;  %v1244_v13 = vadd.f32 %v3415_v15, %v4194_v25  ;;  %v1465_v26 = vpack.c.bf16 %v1409_v21, %v1408_v0 }
 0x165   : > { %v3420_v27 = vpop.f32.mrf.mxu0  ;;  %v1406_v25 = vmax.f32 %v1188_v32, 0.0 }
 0x166   : > { %v1263_v52 = vadd.f32 %v3420_v27, %v4152_v7  ;;  %v1183_v27 = vadd.f32 %v3400_v55, %v4214_v34  ;;  %v1422_v35 = vmax.f32 %v1252_v24, 0.0  ;;  %v1420_v15 = vmax.f32 %v1244_v13, 0.0  ;;  %v632_v55 = vpop.permute.xlu1 %631 }
 0x167   : > { %v1254_v54 = vpop.f32.mrf.mxu0  ;;  %v1236_v24 = vadd.f32 %v1235_v38, %v4222_v39  ;;  %v1172_v39 = vadd.f32 %v4348_v46, %v4240_v45  ;;  %v1417_v13 = vmax.f32 %v1231_v63, 0.0 }
 0x168   : > { %v1425_v8 = vmax.f32 %v1263_v52, 0.0  ;;  %v1255_v59 = vadd.f32 %v1254_v54, %v4172_v16  ;;  %v1239_v52 = vadd.f32 %v1238_v37, %v4230_v42  ;;  %v1405_v34 = vmax.f32 %v1183_v27, 0.0 }
 0x169   : > { %v3423_v7 = vpop.f32.mrf.mxu0  ;;  %v1175_v42 = vadd.f32 %v4356_v49, %v4242_v3  ;;  %v1464_v37 = vpack.c.bf16 %v1407_v5, %v1406_v25  ;;  %v1418_v0 = vmax.f32 %v1236_v24, 0.0  ;;  %v1223_v27 = vadd.f32 %v4386_v47, %v4285_v62 }
 0x16a   : > { %v1423_v41 = vmax.f32 %v1255_v59, 0.0  ;;  %v1473_v22 = vpack.c.bf16 %v1425_v8, %v1424_v14  ;;  %v1276_v54 = vadd.f32 %v3423_v7, %v637_v36  ;;  %v1471_v14 = vpack.c.bf16 %v1421_v28, %v1420_v15 }
 0x16b   : > { %v1267_v60 = vpop.f32.mrf.mxu0  ;;  %v1419_v33 = vmax.f32 %v1239_v52, 0.0  ;;  %v1404_v59 = vmax.f32 %v1180_v19, 0.0  ;;  %v1403_v32 = vmax.f32 %v1175_v42, 0.0  ;;  %v1402_v46 = vmax.f32 %v1172_v39, 0.0  ;;  %v4781_v42 = vld [vmem:[#allocation21_spill] sm:$0xff] }
 0x16c   : > { %v1472_v16 = vpack.c.bf16 %v1423_v41, %v1422_v35  ;;  %3098 = vmatprep.subr.bf16.mxu1 %v1473_v22  ;;  %v1268_v1 = vadd.f32 %v1267_v60, %v627_v30  ;;  %v1428_v40 = vmax.f32 %v1276_v54, 0.0  ;;  %v1220_v22 = vadd.f32 %v4380_v2, %v4277_v58  ;;  %v3550_v39 = vld [vmem:[#allocation2 + $0x420] ss:$16 sps:$4 sm:$0xff]  }
 0x16d   : > { %v3424_v53 = vpop.f32.mrf.mxu0  ;;  %3099 = vmatpush3.bf16.msra.mxu1 %v1465_v26  ;;  %v1463_v4 = vpack.c.bf16 %v1405_v34, %v1404_v59  ;;  %v1470_v35 = vpack.c.bf16 %v1419_v33, %v1418_v0  ;;  %v1462_v60 = vpack.c.bf16 %v1403_v32, %v1402_v46  ;;  %v1215_v62 = vadd.f32 %v4370_v20, %v4304_v12 }
 0x16e   : > { %v1279_v57 = vadd.f32 %v3424_v53, %v642_v31  ;;  %3100 = vmatprep.subr.bf16.mxu1 %v1472_v16  ;;  %v1228_v31 = vadd.f32 %v4378_v43, %v4251_v48  ;;  %v1426_v3 = vmax.f32 %v1268_v1, 0.0  ;;  %v1415_v52 = vmax.f32 %v1223_v27, 0.0 }
 0x16f   : > { %v1270_v21 = vpop.f32.mrf.mxu0  ;;  %v1212_v30 = vadd.f32 %v4364_v9, %v4299_v10  ;;  %v1413_v20 = vmax.f32 %v1215_v62, 0.0  ;;  %v1207_v25 = vadd.f32 %v4374_v23, %v4308_v18  ;;  %v4780_v9 = vld [vmem:[#allocation26_spill] sm:$0xff]  ;;  %v4786_v62 = vld [vmem:[#allocation7_spill] sm:$0xff] }
 0x170   : > { %v1429_v36 = vmax.f32 %v1279_v57, 0.0  ;;  %v1271_v8 = vadd.f32 %v1270_v21, %v632_v55  ;;  %v1416_v43 = vmax.f32 %v1228_v31, 0.0  ;;  %v1204_v34 = vadd.f32 %v4780_v9, %v4306_v17  ;;  %v3545_v21 = vld [vmem:[#allocation2 + $0x400] ss:$16 sps:$4 sm:$0xff]   ;;  %v4783_v17 = vld [vmem:[#allocation18_spill] sm:$0xff] }
 0x171   : > { %v3427_v38 = vpop.f32.mrf.mxu0  ;;  %3101 = vmatpush3.bf16.msra.mxu1 %v1464_v37  ;;  %v1412_v10 = vmax.f32 %v1212_v30, 0.0  ;;  %v1411_v57 = vmax.f32 %v1207_v25, 0.0  ;;  %v4791_v9 = vld [vmem:[#allocation10_spill] sm:$0xff] }
 0x172   : > { %v4418_v49 = vpack.c.bf16 %v1429_v36, %v1428_v40  ;;  %v1427_v51 = vmax.f32 %v1271_v8, 0.0  ;;  %3102 = vmatprep.subr.bf16.mxu1 %v1471_v14  ;;  %v1292_v48 = vadd.f32 %v3427_v38, %v4362_v6  ;;  %v1469_v47 = vpack.c.bf16 %v1417_v13, %v1416_v43  ;;  %v4782_v14 = vld [vmem:[#allocation16_spill] sm:$0xff]  ;;  %v3548_v40 = vld [vmem:[#allocation2 + $0x424] ss:$16 sps:$4 sm:$0xff]  }
 0x173   : > { %v1283_v7 = vpop.f32.mrf.mxu0  ;;  %v1467_v1 = vpack.c.bf16 %v1413_v20, %v1412_v10  ;;  %v1410_v18 = vmax.f32 %v1204_v34, 0.0  ;;  %v3551_v38 = vld [vmem:[#allocation2 + $0x444] ss:$16 sps:$4 sm:$0xff]   ;;  %v4790_v20 = vld [vmem:[#allocation14_spill] sm:$0xff] }
 0x174   : > { %v4422_v45 = vpack.c.bf16 %v1427_v51, %v1426_v3  ;;  %v1284_v5 = vadd.f32 %v1283_v7, %v4382_v50  ;;  %v1432_v6 = vmax.f32 %v1292_v48, 0.0  ;;  %v1414_v50 = vmax.f32 %v1220_v22, 0.0  ;;  %v3554_v13 = vld [vmem:[#allocation2 + $0x464] ss:$16 sps:$4 sm:$0xff]   ;;  %v3556_v48 = vld [vmem:[#allocation2 + $0x460] ss:$16 sps:$4 sm:$0xff]  }
 0x175   : > { %v3428_v41 = vpop.f32.mrf.mxu0  ;;  %3103 = vmatpush3.bf16.msra.mxu1 %v1463_v4  ;;  %v1466_v37 = vpack.c.bf16 %v1411_v57, %v1410_v18  ;;  %v3553_v4 = vld [vmem:[#allocation2 + $0x440] ss:$16 sps:$4 sm:$0xff]   ;;  %v3557_v43 = vld [vmem:[#allocation2 + $0x484] ss:$16 sps:$4 sm:$0xff]  }
 0x176   : > { %v1295_v28 = vadd.f32 %v3428_v41, %v4366_v11  ;;  %3104 = vmatprep.subr.bf16.mxu1 %v1470_v35  ;;  %v1430_v11 = vmax.f32 %v1284_v5, 0.0  ;;  %v1468_v15 = vpack.c.bf16 %v1415_v52, %v1414_v50  ;;  %v4784_v41 = vld [vmem:[#allocation8_spill] sm:$0xff]  ;;  %v4787_v52 = vld [vmem:[#allocation9_spill] sm:$0xff] }
 0x177   : > { %v1286_v26 = vpop.f32.mrf.mxu0  ;;  %v4789_v50 = vld [vmem:[#allocation12_spill] sm:$0xff]  ;;  %v3560_v18 = vld [vmem:[#allocation2 + $0x4a4] ss:$16 sps:$4 sm:$0xff]  }
 0x178   : > { %v1433_v16 = vmax.f32 %v1295_v28, 0.0  ;;  %v1287_v54 = vadd.f32 %v1286_v26, %v4384_v56  ;;  %v4785_v28 = vld [vmem:[#allocation5_spill] sm:$0xff] }
 0x179   : > { %v4434_v58 = vpop.f32.mrf.mxu0  ;;  %3105 = vmatpush3.bf16.msra.mxu1 %v1462_v60 }
 0x17a   : > { %v4436_v2 = vpack.c.bf16 %v1433_v16, %v1432_v6  ;;  %v1431_v19 = vmax.f32 %v1287_v54, 0.0  ;;  %3106 = vmatprep.subr.bf16.mxu1 %v1469_v47  ;;  %v4788_v16 = vld [vmem:[#allocation6_spill] sm:$0xff] }
 0x17b   : > { %v4438_v12 = vpop.f32.mrf.mxu0 }
 0x17c   : > { %v4442_v56 = vpack.c.bf16 %v1431_v19, %v1430_v11 }
 0x17d   : > { %v4444_v53 = vpop.f32.mrf.mxu0  ;;  %3107 = vmatpush3.bf16.msra.mxu1 %v4346_v44 }
 0x17e   : > { %3108 = vmatprep.subr.bf16.mxu1 %v1468_v15 }
 0x17f   : > { %v4449_v24 = vpop.f32.mrf.mxu0 }
 0x181   : > { %v3435_v55 = vpop.f32.mrf.mxu0  ;;  %3109 = vmatpush3.bf16.msra.mxu1 %v4781_v42  ;;  %v4792_v42 = vld [vmem:[#allocation11_spill] sm:$0xff] }
 0x182   : > { %3110 = vmatprep.subr.bf16.mxu1 %v1467_v1  ;;  %v1324_v47 = vadd.f32 %v3435_v55, %v4786_v62  ;;  %v3559_v1 = vld [vmem:[#allocation2 + $0x480] ss:$16 sps:$4 sm:$0xff]  }
 0x183   : > { %v1315_v23 = vpop.f32.mrf.mxu0  ;;  %v4799_v62 = vld [vmem:[#allocation25_spill] sm:$0xff] }
 0x184   : > { %v1440_v57 = vmax.f32 %v1324_v47, 0.0  ;;  %v1316_v55 = vadd.f32 %v1315_v23, %v4792_v42 }
 0x185   : > { %v3436_v63 = vpop.f32.mrf.mxu0  ;;  %3111 = vmatpush3.bf16.msra.mxu1 %v4782_v14 }
 0x186   : > { %3112 = vmatprep.subr.bf16.mxu1 %v1466_v37  ;;  %v1327_v22 = vadd.f32 %v3436_v63, %v4784_v41  ;;  %v4793_v37 = vld [vmem:[#allocation13_spill] sm:$0xff]  ;;  %v4797_v41 = vld [vmem:[#allocation19_spill] sm:$0xff] }
 0x187   : > { %v1318_v44 = vpop.f32.mrf.mxu0 }
 0x188   : > { %v1441_v30 = vmax.f32 %v1327_v22, 0.0  ;;  %v1319_v11 = vadd.f32 %v1318_v44, %v4789_v50 }
 0x189   : > { %v4453_v33 = vpop.f32.mrf.mxu0  ;;  %3113 = vmatpush3.bf16.msra.mxu1 %v4783_v17 }
 0x18b   : > { %v4456_v36 = vpop.f32.mrf.mxu0 }
 0x18c   : > { %2099 = vmatmul.mubr.bf16.vlgmr.msra.gmra.mxu1 %v3545_v21 }
 0x18d   : > { %v4458_v8 = vpop.f32.mrf.mxu0  ;;  %2106 = vmatprep.mubr.bf16.mxu1 %v3548_v40  ;;  %v4794_v40 = vld [vmem:[#allocation17_spill] sm:$0xff] }
 0x18e   : > { %v1311_v44 = vadd.f32 %v4444_v53, %v4794_v40  ;;  %v4798_v53 = vld [vmem:[#allocation23_spill] sm:$0xff] }
 0x18f   : > { %v4460_v59 = vpop.f32.mrf.mxu0 }
 0x191   : > { %v4462_v31 = vpop.f32.mrf.mxu0 }
 0x193   : > { %v4464_v0 = vpop.f32.mrf.mxu0 }
 0x194   : > { %2107 = vmatmul.mubr.bf16.gmra.mxu1 %v3550_v39  ;;  %v1481_v39 = vpack.c.bf16 %v1441_v30, %v1440_v57  ;;  %v4801_v30 = vld [vmem:[#allocation24_spill] sm:$0xff] }
 0x195   : > { %v3444_v3 = vpop.f32.mrf.mxu0  ;;  %2114 = vmatprep.mubr.bf16.mxu1 %v3551_v38  ;;  %v1439_v38 = vmax.f32 %v1319_v11, 0.0 }
 0x197   : > { %v4466_v51 = vpop.f32.mrf.mxu0 }
 0x199   : > { %v3447_v32 = vpop.f32.mrf.mxu0 }
 0x19a   : > { %v1372_v63 = vadd.f32 %v3447_v32, %v4793_v37 }
 0x19b   : > { %v1363_v7 = vpop.f32.mrf.mxu0 }
 0x19c   : > { %2115 = vmatmul.mubr.bf16.gmra.mxu1 %v3553_v4  ;;  %v1452_v32 = vmax.f32 %v1372_v63, 0.0  ;;  %v1364_v22 = vadd.f32 %v1363_v7, %v4797_v41  ;;  %v1356_v7 = vadd.f32 %v4462_v31, %v4801_v30  ;;  %v4804_v31 = vld [vmem:[#allocation30_spill] sm:$0xff] }
 0x19d   : > { %v3448_v27 = vpop.f32.mrf.mxu0  ;;  %2122 = vmatprep.mubr.bf16.mxu1 %v3554_v13  ;;  %v4795_v13 = vld [vmem:[#allocation20_spill] sm:$0xff] }
 0x19e   : > { %v1375_v25 = vadd.f32 %v3448_v27, %v4790_v20  ;;  %v1450_v50 = vmax.f32 %v1364_v22, 0.0  ;;  %v4802_v20 = vld [vmem:[#allocation28_spill] sm:$0xff] }
 0x19f   : > { %v1366_v35 = vpop.f32.mrf.mxu0  ;;  %v3595_v41 = vld [vmem:[#allocation2 + $0x40c] ss:$16 sps:$4 sm:$0xff]   ;;  %v3593_v22 = vld [vmem:[#allocation2 + $0x408] ss:$16 sps:$4 sm:$0xff]  }
 0x1a0   : > { %v1453_v4 = vmax.f32 %v1375_v25, 0.0  ;;  %v1367_v27 = vadd.f32 %v1366_v35, %v4795_v13  ;;  %v1359_v35 = vadd.f32 %v3444_v3, %v4799_v62  ;;  %v1351_v3 = vadd.f32 %v4466_v51, %v4802_v20  ;;  %v4805_v51 = vld [vmem:[#allocation29_spill] sm:$0xff]  ;;  %v3602_v62 = vld [vmem:[#allocation2 + $0x46c] ss:$16 sps:$4 sm:$0xff]   ;;  %v3616_v30 = vld [vmem:[#allocation2 + $0x4e8] ss:$16 sps:$4 sm:$0xff]  }
 0x1a1   : > { %v3451_v46 = vpop.f32.mrf.mxu0  ;;  %v1340_v37 = vadd.f32 %v4453_v33, %v4805_v51  ;;  %v3569_v33 = vld [vmem:[#allocation2 + $0x504] ss:$16 sps:$4 sm:$0xff]   ;;  %v3580_v13 = vld [vmem:[#allocation2 + $0x560] ss:$16 sps:$4 sm:$0xff]  }
 0x1a2   : > { %v1388_v60 = vadd.f32 %v3451_v46, %v4785_v28  ;;  %v4796_v46 = vld [vmem:[#allocation15_spill] sm:$0xff]  ;;  %v1303_v28 = vadd.f32 %v4449_v24, %v4798_v53  ;;  %v1487_v47 = vpack.c.bf16 %v1453_v4, %v1452_v32  ;;  %v1449_v24 = vmax.f32 %v1359_v35, 0.0  ;;  %v3598_v53 = vld [vmem:[#allocation2 + $0x428] ss:$16 sps:$4 sm:$0xff]  }
 0x1a3   : > { %v1379_v5 = vpop.f32.mrf.mxu0  ;;  %v1308_v23 = vadd.f32 %v4434_v58, %v4796_v46  ;;  %v1447_v42 = vmax.f32 %v1351_v3, 0.0  ;;  %v3587_v46 = vld [vmem:[#allocation2 + $0x5c4] ss:$16 sps:$4 sm:$0xff]   ;;  %v3592_v32 = vld [vmem:[#allocation2 + $0x5e0] ss:$16 sps:$4 sm:$0xff]  }
 0x1a4   : > { %2123 = vmatmul.mubr.bf16.gmra.mxu1 %v3556_v48  ;;  %v1380_v6 = vadd.f32 %v1379_v5, %v4787_v52  ;;  %v1456_v15 = vmax.f32 %v1388_v60, 0.0  ;;  %v1437_v5 = vmax.f32 %v1311_v44, 0.0  ;;  %v3562_v52 = vld [vmem:[#allocation2 + $0x4a0] ss:$16 sps:$4 sm:$0xff]   ;;  %v3604_v35 = vld [vmem:[#allocation2 + $0x468] ss:$16 sps:$4 sm:$0xff]  }
 0x1a5   : > { %v3452_v26 = vpop.f32.mrf.mxu0  ;;  %2130 = vmatprep.mubr.bf16.mxu1 %v3557_v43  ;;  %v1438_v43 = vmax.f32 %v1316_v55, 0.0  ;;  %v3565_v55 = vld [vmem:[#allocation2 + $0x4c0] ss:$16 sps:$4 sm:$0xff]  }
 0x1a6   : > { %v1391_v54 = vadd.f32 %v3452_v26, %v4788_v16  ;;  %v1454_v14 = vmax.f32 %v1380_v6, 0.0  ;;  %v1451_v26 = vmax.f32 %v1367_v27, 0.0  ;;  %v1436_v6 = vmax.f32 %v1308_v23, 0.0  ;;  %v4800_v16 = vld [vmem:[#allocation22_spill] sm:$0xff]  ;;  %v3581_v27 = vld [vmem:[#allocation2 + $0x584] ss:$16 sps:$4 sm:$0xff]  }
 0x1a7   : > { %v1382_v19 = vpop.f32.mrf.mxu0  ;;  %v1480_v60 = vpack.c.bf16 %v1439_v38, %v1438_v43  ;;  %v1300_v58 = vadd.f32 %v4438_v12, %v4800_v16  ;;  %v4803_v12 = vld [vmem:[#allocation27_spill] sm:$0xff]  ;;  %v3611_v16 = vld [vmem:[#allocation2 + $0x4cc] ss:$16 sps:$4 sm:$0xff]  }
 0x1a8   : > { %v1457_v10 = vmax.f32 %v1391_v54, 0.0  ;;  %v1383_v34 = vadd.f32 %v1382_v19, %v4791_v9  ;;  %v3563_v54 = vld [vmem:[#allocation2 + $0x4c4] ss:$16 sps:$4 sm:$0xff]   ;;  %v1479_v11 = vpack.c.bf16 %v1437_v5, %v1436_v6  ;;  %v1435_v19 = vmax.f32 %v1303_v28, 0.0  ;;  %v3589_v23 = vld [vmem:[#allocation2 + $0x5c0] ss:$16 sps:$4 sm:$0xff]  }
 0x1a9   : > { %v1486_v25 = vpack.c.bf16 %v1451_v26, %v1450_v50  ;;  %v1348_v9 = vadd.f32 %v4464_v0, %v4803_v12  ;;  %v3590_v43 = vld [vmem:[#allocation2 + $0x5e4] ss:$16 sps:$4 sm:$0xff]   ;;  %v3596_v5 = vld [vmem:[#allocation2 + $0x42c] ss:$16 sps:$4 sm:$0xff]   ;;  %v3607_v26 = vld [vmem:[#allocation2 + $0x488] ss:$16 sps:$4 sm:$0xff]  }
 0x1aa   : > { %v1489_v21 = vpack.c.bf16 %v1457_v10, %v1456_v15  ;;  %v1455_v17 = vmax.f32 %v1383_v34, 0.0  ;;  %v1434_v15 = vmax.f32 %v1300_v58, 0.0  ;;  %v1448_v10 = vmax.f32 %v1356_v7, 0.0  ;;  %v3599_v28 = vld [vmem:[#allocation2 + $0x44c] ss:$16 sps:$4 sm:$0xff]  }
 0x1ab   : > { %v1446_v63 = vmax.f32 %v1348_v9, 0.0  ;;  %v3610_v6 = vld [vmem:[#allocation2 + $0x4a8] ss:$16 sps:$4 sm:$0xff]   ;;  %v3617_v7 = vld [vmem:[#allocation2 + $0x50c] ss:$16 sps:$4 sm:$0xff]  }
 0x1ac   : > { %v1488_v48 = vpack.c.bf16 %v1455_v17, %v1454_v14  ;;  %2131 = vmatmul.mubr.bf16.gmra.mxu1 %v3559_v1  ;;  %3210 = vmatprep.subr.bf16.mxu1 %v1489_v21  ;;  %v1478_v34 = vpack.c.bf16 %v1435_v19, %v1434_v15  ;;  %v1343_v1 = vadd.f32 %v4458_v8, %v4804_v31  ;;  %v1444_v8 = vmax.f32 %v1340_v37, 0.0  ;;  %v3613_v58 = vld [vmem:[#allocation2 + $0x4c8] ss:$16 sps:$4 sm:$0xff]   ;;  %v3623_v15 = vld [vmem:[#allocation2 + $0x54c] ss:$16 sps:$4 sm:$0xff]  }
 0x1ad   : > { %3211 = vmatpush3.bf16.msra.mxu1 %v1481_v39  ;;  %2138 = vmatprep.mubr.bf16.mxu1 %v3560_v18  ;;  %v1485_v57 = vpack.c.bf16 %v1449_v24, %v1448_v10  ;;  %v3566_v18 = vld [vmem:[#allocation2 + $0x4e4] ss:$16 sps:$4 sm:$0xff]   ;;  %v1335_v21 = vadd.f32 %v4460_v59, %v4402_v61  ;;  %v1484_v0 = vpack.c.bf16 %v1447_v42, %v1446_v63  ;;  %v3568_v39 = vld [vmem:[#allocation2 + $0x4e0] ss:$16 sps:$4 sm:$0xff]   ;;  %v3619_v50 = vld [vmem:[#allocation2 + $0x508] ss:$16 sps:$4 sm:$0xff]  }
 0x1ae   : > { %3212 = vmatprep.subr.bf16.mxu1 %v1488_v48  ;;  %v1445_v14 = vmax.f32 %v1343_v1, 0.0  ;;  %v1332_v17 = vadd.f32 %v4456_v36, %v4397_v29  ;;  %v3571_v61 = vld [vmem:[#allocation2 + $0x500] ss:$16 sps:$4 sm:$0xff]   ;;  %v3575_v36 = vld [vmem:[#allocation2 + $0x544] ss:$16 sps:$4 sm:$0xff]  }
 0x1af   : > { %v1443_v44 = vmax.f32 %v1335_v21, 0.0  ;;  %v3574_v29 = vld [vmem:[#allocation2 + $0x520] ss:$16 sps:$4 sm:$0xff]   ;;  %v3578_v59 = vld [vmem:[#allocation2 + $0x564] ss:$16 sps:$4 sm:$0xff]  }
 0x1b0   : > { %v1483_v40 = vpack.c.bf16 %v1445_v14, %v1444_v8  ;;  %v1442_v38 = vmax.f32 %v1332_v17, 0.0  ;;  %v3584_v48 = vld [vmem:[#allocation2 + $0x5a4] ss:$16 sps:$4 sm:$0xff]   ;;  %v3626_v42 = vld [vmem:[#allocation2 + $0x56c] ss:$16 sps:$4 sm:$0xff]  }
 0x1b1   : > { %3213 = vmatpush3.bf16.msra.mxu1 %v1480_v60  ;;  %v3601_v60 = vld [vmem:[#allocation2 + $0x448] ss:$16 sps:$4 sm:$0xff]  }
 0x1b2   : > { %3214 = vmatprep.subr.bf16.mxu1 %v1487_v47  ;;  %v1482_v4 = vpack.c.bf16 %v1443_v44, %v1442_v38  ;;  %v3605_v47 = vld [vmem:[#allocation2 + $0x48c] ss:$16 sps:$4 sm:$0xff]   ;;  %v3628_v21 = vld [vmem:[#allocation2 + $0x568] ss:$16 sps:$4 sm:$0xff]  }
 0x1b3   : > { %v3629_v38 = vld [vmem:[#allocation2 + $0x588] ss:$16 sps:$4 sm:$0xff]  }
 0x1b4   : > { %2139 = vmatmul.mubr.bf16.gmra.mxu1 %v3562_v52  ;;  %v3608_v52 = vld [vmem:[#allocation2 + $0x4ac] ss:$16 sps:$4 sm:$0xff]  }
 0x1b5   : > { %3215 = vmatpush3.bf16.msra.mxu1 %v1479_v11  ;;  %2146 = vmatprep.mubr.bf16.mxu1 %v3563_v54  ;;  %v3614_v54 = vld [vmem:[#allocation2 + $0x4ec] ss:$16 sps:$4 sm:$0xff]  }
 0x1b6   : > { %3216 = vmatprep.subr.bf16.mxu1 %v1486_v25  ;;  %v3620_v11 = vld [vmem:[#allocation2 + $0x52c] ss:$16 sps:$4 sm:$0xff]   ;;  %v3622_v25 = vld [vmem:[#allocation2 + $0x528] ss:$16 sps:$4 sm:$0xff]  }
 0x1b9   : > { %3217 = vmatpush3.bf16.msra.mxu1 %v1478_v34 }
 0x1ba   : > { %3218 = vmatprep.subr.bf16.mxu1 %v1485_v57  ;;  %v3625_v57 = vld [vmem:[#allocation2 + $0x548] ss:$16 sps:$4 sm:$0xff]  }
 0x1bc   : > { %2147 = vmatmul.mubr.bf16.gmra.mxu1 %v3565_v55 }
 0x1bd   : > { %3219 = vmatpush3.bf16.msra.mxu1 %v4436_v2  ;;  %2154 = vmatprep.mubr.bf16.mxu1 %v3566_v18  ;;  %v3572_v2 = vld [vmem:[#allocation2 + $0x524] ss:$16 sps:$4 sm:$0xff]  }
 0x1be   : > { %3220 = vmatprep.subr.bf16.mxu1 %v1484_v0  ;;  %v3631_v0 = vld [vmem:[#allocation2 + $0x58c] ss:$16 sps:$4 sm:$0xff]  }
 0x1c1   : > { %3221 = vmatpush3.bf16.msra.mxu1 %v4442_v56  ;;  %v3577_v56 = vld [vmem:[#allocation2 + $0x540] ss:$16 sps:$4 sm:$0xff]  }
 0x1c2   : > { %3222 = vmatprep.subr.bf16.mxu1 %v1483_v40 }
 0x1c4   : > { %2155 = vmatmul.mubr.bf16.gmra.mxu1 %v3568_v39 }
 0x1c5   : > { %3223 = vmatpush3.bf16.msra.mxu1 %v4418_v49  ;;  %2162 = vmatprep.mubr.bf16.mxu1 %v3569_v33  ;;  %v3583_v49 = vld [vmem:[#allocation2 + $0x580] ss:$16 sps:$4 sm:$0xff]  }
 0x1c6   : > { %3224 = vmatprep.subr.bf16.mxu1 %v1482_v4  ;;  %v3634_v4 = vld [vmem:[#allocation2 + $0x5ac] ss:$16 sps:$4 sm:$0xff]  }
 0x1c9   : > { %3225 = vmatpush3.bf16.msra.mxu1 %v4422_v45  ;;  %v3586_v45 = vld [vmem:[#allocation2 + $0x5a0] ss:$16 sps:$4 sm:$0xff]  }
 0x1cc   : > { %2163 = vmatmul.mubr.bf16.gmra.mxu1 %v3571_v61 }
 0x1cd   : > { %2170 = vmatprep.mubr.bf16.mxu1 %v3572_v2 }
 0x1d4   : > { %2171 = vmatmul.mubr.bf16.gmra.mxu1 %v3574_v29 }
 0x1d5   : > { %2178 = vmatprep.mubr.bf16.mxu1 %v3575_v36 }
 0x1dc   : > { %2179 = vmatmul.mubr.bf16.gmra.mxu1 %v3577_v56 }
 0x1dd   : > { %2186 = vmatprep.mubr.bf16.mxu1 %v3578_v59 }
 0x1e4   : > { %2187 = vmatmul.mubr.bf16.gmra.mxu1 %v3580_v13  ;;  %v3632_v13 = vld [vmem:[#allocation2 + $0x5a8] ss:$16 sps:$4 sm:$0xff]  }
 0x1e5   : > { %2194 = vmatprep.mubr.bf16.mxu1 %v3581_v27  ;;  %v3637_v27 = vld [vmem:[#allocation2 + $0x5cc] ss:$16 sps:$4 sm:$0xff]  }
 0x1ec   : > { %2195 = vmatmul.mubr.bf16.gmra.mxu1 %v3583_v49 }
 0x1ed   : > { %2202 = vmatprep.mubr.bf16.mxu1 %v3584_v48 }
 0x1f4   : > { %2203 = vmatmul.mubr.bf16.gmra.mxu1 %v3586_v45  ;;  %v4527_v45 = vpop.permute.xlu0 %1738 }
 0x1f5   : > { %2210 = vmatprep.mubr.bf16.mxu1 %v3587_v46  ;;  %4806 = vst [vmem:[#allocation26_spill] sm:$0xff] %v4527_v45 }
 0x1fc   : > { %2211 = vmatmul.mubr.bf16.gmra.mxu1 %v3589_v23 }
 0x1fd   : > { %2218 = vmatprep.mubr.bf16.mxu1 %v3590_v43 }
 0x204   : > { %2219 = vmatmul.mubr.bf16.gmra.mxu1 %v3592_v32  ;;  %v4531_v32 = vpop.permute.xlu1 %1743 }
 0x205   : > { %2259 = vmatprep.mubr.bf16.mxu1 %v3595_v41  ;;  %4807 = vst [vmem:[#allocation21_spill] sm:$0xff] %v4531_v32 }
 0x20c   : > { %2260 = vmatmul.mubr.bf16.vlgmr.msra.gmra.mxu1 %v3593_v22  ;;  %v3635_v22 = vld [vmem:[#allocation2 + $0x5c8] ss:$16 sps:$4 sm:$0xff]  }
 0x20d   : > { %2267 = vmatprep.mubr.bf16.mxu1 %v3596_v5  ;;  %v3640_v5 = vld [vmem:[#allocation2 + $0x5ec] ss:$16 sps:$4 sm:$0xff]  }
 0x214   : > { %2268 = vmatmul.mubr.bf16.gmra.mxu1 %v3598_v53  ;;  %v4533_v53 = vpop.permute.xlu0 %1658 }
 0x215   : > { %2275 = vmatprep.mubr.bf16.mxu1 %v3599_v28 }
 0x21c   : > { %2276 = vmatmul.mubr.bf16.gmra.mxu1 %v3601_v60 }
 0x21d   : > { %2283 = vmatprep.mubr.bf16.mxu1 %v3602_v62 }
 0x224   : > { %2284 = vmatmul.mubr.bf16.gmra.mxu1 %v3604_v35  ;;  %v4537_v35 = vpop.permute.xlu1 %1663 }
 0x225   : > { %2291 = vmatprep.mubr.bf16.mxu1 %v3605_v47 }
 0x22c   : > { %2292 = vmatmul.mubr.bf16.gmra.mxu1 %v3607_v26 }
 0x22d   : > { %2299 = vmatprep.mubr.bf16.mxu1 %v3608_v52  ;;  %v4541_v52 = vpop.permute.xlu0 %1728 }
 0x22e   : > { %4808 = vst [vmem:[#allocation16_spill] sm:$0xff] %v4541_v52 }
 0x234   : > { %2300 = vmatmul.mubr.bf16.gmra.mxu1 %v3610_v6 }
 0x235   : > { %2307 = vmatprep.mubr.bf16.mxu1 %v3611_v16  ;;  %v3638_v16 = vld [vmem:[#allocation2 + $0x5e8] ss:$16 sps:$4 sm:$0xff]  }
 0x23c   : > { %2308 = vmatmul.mubr.bf16.gmra.mxu1 %v3613_v58 }
 0x23d   : > { %2315 = vmatprep.mubr.bf16.mxu1 %v3614_v54 }
 0x244   : > { %2316 = vmatmul.mubr.bf16.gmra.mxu1 %v3616_v30  ;;  %v4545_v30 = vpop.permute.xlu1 %1733 }
 0x245   : > { %2323 = vmatprep.mubr.bf16.mxu1 %v3617_v7  ;;  %4809 = vst [vmem:[#allocation18_spill] sm:$0xff] %v4545_v30 }
 0x24c   : > { %v3114_v19 = vpop.f32.mrf.mxu1  ;;  %2324 = vmatmul.mubr.bf16.gmra.mxu1 %v3619_v50  ;;  %v4547_v50 = vpop.permute.xlu0 %1648 }
 0x24d   : > { %2331 = vmatprep.mubr.bf16.mxu1 %v3620_v11 }
 0x24e   : > { %v3115_v24 = vpop.f32.mrf.mxu1 }
 0x24f   : > { %v4507_v20 = vadd.f32 %v3115_v24, %v3114_v19 }
 0x250   : > { %v3117_v3 = vpop.f32.mrf.mxu1 }
 0x252   : > { %v3118_v10 = vpop.f32.mrf.mxu1 }
 0x253   : > { %v4509_v12 = vadd.f32 %v3118_v10, %v3117_v3  ;;  %v4551_v3 = vpop.permute.xlu1 %1653  ;;  %v4555_v10 = vpop.permute.xlu0 %1718 }
 0x254   : > { %v3120_v9 = vpop.f32.mrf.mxu1  ;;  %2332 = vmatmul.mubr.bf16.gmra.mxu1 %v3622_v25  ;;  %4810 = vst [vmem:[#allocation8_spill] sm:$0xff] %v4555_v10 }
 0x255   : > { %2339 = vmatprep.mubr.bf16.mxu1 %v3623_v15 }
 0x256   : > { %v3121_v34 = vpop.f32.mrf.mxu1 }
 0x257   : > { %v4511_v31 = vadd.f32 %v3121_v34, %v3120_v9 }
 0x258   : > { %v3123_v1 = vpop.f32.mrf.mxu1 }
 0x25a   : > { %v3124_v55 = vpop.f32.mrf.mxu1 }
 0x25b   : > { %v4513_v18 = vadd.f32 %v3124_v55, %v3123_v1  ;;  %v4561_v55 = vpop.permute.xlu0 %1638 }
 0x25c   : > { %v3126_v51 = vpop.f32.mrf.mxu1  ;;  %2340 = vmatmul.mubr.bf16.gmra.mxu1 %v3625_v57  ;;  %v4559_v57 = vpop.permute.xlu1 %1723 }
 0x25d   : > { %2347 = vmatprep.mubr.bf16.mxu1 %v3626_v42  ;;  %4811 = vst [vmem:[#allocation5_spill] sm:$0xff] %v4559_v57 }
 0x25e   : > { %v3127_v37 = vpop.f32.mrf.mxu1 }
 0x25f   : > { %v4515_v63 = vadd.f32 %v3127_v37, %v3126_v51 }
 0x260   : > { %v3129_v14 = vpop.f32.mrf.mxu1 }
 0x262   : > { %v3130_v8 = vpop.f32.mrf.mxu1 }
 0x263   : > { %v4517_v17 = vadd.f32 %v3130_v8, %v3129_v14 }
 0x264   : > { %v3132_v40 = vpop.f32.mrf.mxu1  ;;  %2348 = vmatmul.mubr.bf16.gmra.mxu1 %v3628_v21  ;;  %v4565_v21 = vpop.permute.xlu1 %1643 }
 0x265   : > { %2355 = vmatprep.mubr.bf16.mxu1 %v3631_v0 }
 0x266   : > { %v3133_v44 = vpop.f32.mrf.mxu1 }
 0x267   : > { %v4519_v39 = vadd.f32 %v3133_v44, %v3132_v40  ;;  %v4569_v40 = vpop.permute.xlu0 %1708 }
 0x268   : > { %v3135_v33 = vpop.f32.mrf.mxu1  ;;  %4812 = vst [vmem:[#allocation7_spill] sm:$0xff] %v4569_v40 }
 0x26a   : > { %v3136_v61 = vpop.f32.mrf.mxu1 }
 0x26b   : > { %v4521_v2 = vadd.f32 %v3136_v61, %v3135_v33 }
 0x26c   : > { %v3138_v29 = vpop.f32.mrf.mxu1  ;;  %2356 = vmatmul.mubr.bf16.gmra.mxu1 %v3629_v38 }
 0x26d   : > { %2363 = vmatprep.mubr.bf16.mxu1 %v3634_v4  ;;  %v4573_v4 = vpop.permute.xlu1 %1713 }
 0x26e   : > { %v3139_v36 = vpop.f32.mrf.mxu1  ;;  %4813 = vst [vmem:[#allocation9_spill] sm:$0xff] %v4573_v4 }
 0x26f   : > { %v4523_v56 = vadd.f32 %v3139_v36, %v3138_v29  ;;  %v4575_v29 = vpop.permute.xlu0 %1628 }
 0x270   : > { %v3141_v59 = vpop.f32.mrf.mxu1 }
 0x272   : > { %v3142_v49 = vpop.f32.mrf.mxu1 }
 0x273   : > { %v4525_v48 = vadd.f32 %v3142_v49, %v3141_v59 }
 0x274   : > { %v3144_v46 = vpop.f32.mrf.mxu1  ;;  %2364 = vmatmul.mubr.bf16.gmra.mxu1 %v3632_v13 }
 0x275   : > { %2371 = vmatprep.mubr.bf16.mxu1 %v3637_v27  ;;  %v4579_v27 = vpop.permute.xlu1 %1633 }
 0x276   : > { %v3145_v23 = vpop.f32.mrf.mxu1 }
 0x277   : > { %v4529_v43 = vadd.f32 %v3145_v23, %v3144_v46  ;;  %v4583_v23 = vpop.permute.xlu0 %1698 }
 0x278   : > { %v3147_v41 = vpop.f32.mrf.mxu1 }
 0x27a   : > { %v3148_v28 = vpop.f32.mrf.mxu1 }
 0x27b   : > { %v4535_v60 = vadd.f32 %v3148_v28, %v3147_v41  ;;  %v4587_v28 = vpop.permute.xlu1 %1703 }
 0x27c   : > { %v3150_v62 = vpop.f32.mrf.mxu1  ;;  %2372 = vmatmul.mubr.bf16.gmra.mxu1 %v3635_v22  ;;  %4814 = vst [vmem:[#allocation6_spill] sm:$0xff] %v4587_v28 }
 0x27d   : > { %2379 = vmatprep.mubr.bf16.mxu1 %v3640_v5 }
 0x27e   : > { %v3151_v47 = vpop.f32.mrf.mxu1 }
 0x27f   : > { %v4539_v26 = vadd.f32 %v3151_v47, %v3150_v62  ;;  %v4589_v47 = vpop.permute.xlu0 %1618 }
 0x280   : > { %v3153_v6 = vpop.f32.mrf.mxu1 }
 0x282   : > { %v3154_v58 = vpop.f32.mrf.mxu1 }
 0x283   : > { %v4543_v54 = vadd.f32 %v3154_v58, %v3153_v6 }
 0x284   : > { %v3156_v7 = vpop.f32.mrf.mxu1  ;;  %2380 = vmatmul.mubr.bf16.gmra.mxu1 %v3638_v16 }
 0x286   : > { %v3157_v11 = vpop.f32.mrf.mxu1 }
 0x287   : > { %v4549_v19 = vadd.f32 %v3157_v11, %v3156_v7  ;;  %v4593_v7 = vpop.permute.xlu1 %1623 }
 0x288   : > { %v3159_v24 = vpop.f32.mrf.mxu1 }
 0x28a   : > { %v3160_v25 = vpop.f32.mrf.mxu1 }
 0x28b   : > { %v4553_v15 = vadd.f32 %v3160_v25, %v3159_v24  ;;  %v4597_v25 = vpop.permute.xlu0 %1688 }
 0x28c   : > { %v3162_v9 = vpop.f32.mrf.mxu1 }
 0x28e   : > { %v3163_v34 = vpop.f32.mrf.mxu1 }
 0x28f   : > { %v4557_v1 = vadd.f32 %v3163_v34, %v3162_v9 }
 0x290   : > { %v3165_v42 = vpop.f32.mrf.mxu1 }
 0x292   : > { %v3166_v51 = vpop.f32.mrf.mxu1 }
 0x293   : > { %v4563_v37 = vadd.f32 %v3166_v51, %v3165_v42  ;;  %v4601_v51 = vpop.permute.xlu1 %1693 }
 0x294   : > { %v3168_v14 = vpop.f32.mrf.mxu1 }
 0x296   : > { %v3169_v0 = vpop.f32.mrf.mxu1 }
 0x297   : > { %v4567_v8 = vadd.f32 %v3169_v0, %v3168_v14  ;;  %v1609_v0 = vpop.permute.xlu0 %1608 }
 0x298   : > { %v3171_v44 = vpop.f32.mrf.mxu1 }
 0x29a   : > { %v3172_v33 = vpop.f32.mrf.mxu1 }
 0x29b   : > { %v4571_v38 = vadd.f32 %v3172_v33, %v3171_v44 }
 0x29c   : > { %v3174_v61 = vpop.f32.mrf.mxu1 }
 0x29e   : > { %v3175_v36 = vpop.f32.mrf.mxu1 }
 0x29f   : > { %v4577_v59 = vadd.f32 %v3175_v36, %v3174_v61  ;;  %v1614_v36 = vpop.permute.xlu1 %1613 }
 0x2a0   : > { %v3177_v13 = vpop.f32.mrf.mxu1 }
 0x2a2   : > { %v3178_v49 = vpop.f32.mrf.mxu1 }
 0x2a3   : > { %v4581_v46 = vadd.f32 %v3178_v49, %v3177_v13 }
 0x2a4   : > { %v3180_v41 = vpop.f32.mrf.mxu1 }
 0x2a6   : > { %v3181_v22 = vpop.f32.mrf.mxu1 }
 0x2a7   : > { %v4585_v5 = vadd.f32 %v3181_v22, %v3180_v41  ;;  %v4607_v41 = vpop.permute.xlu0 %1678 }
 0x2a8   : > { %v3183_v62 = vpop.f32.mrf.mxu1 }
 0x2aa   : > { %v3184_v6 = vpop.f32.mrf.mxu1 }
 0x2ab   : > { %v4591_v16 = vadd.f32 %v3184_v6, %v3183_v62 }
 0x2ac   : > { %v3186_v58 = vpop.f32.mrf.mxu1 }
 0x2ad   : > { %4815 = vst [vmem:[#allocation12_spill] sm:$0xff] %v4591_v16 }
 0x2ae   : > { %v3187_v11 = vpop.f32.mrf.mxu1 }
 0x2af   : > { %v4595_v24 = vadd.f32 %v3187_v11, %v3186_v58  ;;  %v4611_v58 = vpop.permute.xlu1 %1683 }
 0x2b0   : > { %v3189_v9 = vpop.f32.mrf.mxu1 }
 0x2b1   : > { %4816 = vst [vmem:[#allocation14_spill] sm:$0xff] %v4595_v24 }
 0x2b2   : > { %v3190_v34 = vpop.f32.mrf.mxu1 }
 0x2b3   : > { %v4599_v42 = vadd.f32 %v3190_v34, %v3189_v9  ;;  %v1599_v9 = vpop.permute.xlu0 %1598 }
 0x2b4   : > { %v3192_v14 = vpop.f32.mrf.mxu1 }
 0x2b5   : > { %4817 = vst [vmem:[#allocation10_spill] sm:$0xff] %v4599_v42 }
 0x2b6   : > { %v3193_v44 = vpop.f32.mrf.mxu1 }
 0x2b7   : > { %v4603_v33 = vadd.f32 %v3193_v44, %v3192_v14  ;;  %v1604_v44 = vpop.permute.xlu1 %1603 }
 0x2b8   : > { %v3195_v61 = vpop.f32.mrf.mxu1 }
 0x2b9   : > { %4818 = vst [vmem:[#allocation11_spill] sm:$0xff] %v4603_v33 }
 0x2ba   : > { %v3196_v13 = vpop.f32.mrf.mxu1 }
 0x2bb   : > { %v4605_v49 = vadd.f32 %v3196_v13, %v3195_v61  ;;  %v4617_v61 = vpop.permute.xlu0 %1668 }
 0x2bc   : > { %v3198_v22 = vpop.f32.mrf.mxu1 }
 0x2bd   : > { %4819 = vst [vmem:[#allocation13_spill] sm:$0xff] %v4605_v49 }
 0x2be   : > { %v3199_v62 = vpop.f32.mrf.mxu1 }
 0x2bf   : > { %v4609_v6 = vadd.f32 %v3199_v62, %v3198_v22  ;;  %v4621_v22 = vpop.permute.xlu1 %1673 }
 0x2c0   : > { %v3201_v11 = vpop.f32.mrf.mxu1 }
 0x2c1   : > { %4820 = vst [vmem:[#allocation17_spill] sm:$0xff] %v4609_v6  ;;  %v1589_v6 = vpop.permute.xlu0 %1588 }
 0x2c2   : > { %v3202_v34 = vpop.f32.mrf.mxu1  ;;  %v2101_v33 = vadd.f32 %v4507_v20, %v1589_v6 }
 0x2c3   : > { %v4613_v32 = vadd.f32 %v3202_v34, %v3201_v11  ;;  %v1594_v10 = vpop.permute.xlu1 %1593 }
 0x2c4   : > { %v3204_v14 = vpop.f32.mrf.mxu1 }
 0x2c5   : > { %4821 = vst [vmem:[#allocation20_spill] sm:$0xff] %v4613_v32 }
 0x2c6   : > { %v3205_v45 = vpop.f32.mrf.mxu1 }
 0x2c7   : > { %v4615_v30 = vadd.f32 %v3205_v45, %v3204_v14  ;;  %v2104_v45 = vadd.f32 %v4509_v12, %v1594_v10  ;;  %v2117_v10 = vadd.f32 %v4515_v63, %v1609_v0 }
 0x2c8   : > { %v3207_v13 = vpop.f32.mrf.mxu1 }
 0x2c9   : > { %4822 = vst [vmem:[#allocation15_spill] sm:$0xff] %v4615_v30 }
 0x2ca   : > { %v3208_v52 = vpop.f32.mrf.mxu1 }
 0x2cb   : > { %v4619_v49 = vadd.f32 %v3208_v52, %v3207_v13  ;;  %v2109_v52 = vadd.f32 %v4511_v31, %v1599_v9 }
 0x2cc   : > { %v3226_v62 = vpop.f32.mrf.mxu1 }
 0x2cd   : > { %4823 = vst [vmem:[#allocation19_spill] sm:$0xff] %v4619_v49 }
 0x2ce   : > { %v3227_v57 = vpop.f32.mrf.mxu1 }
 0x2cf   : > { %v3228_v11 = vadd.f32 %v3227_v57, %v3226_v62 }
 0x2d0   : > { %v3229_v34 = vpop.f32.mrf.mxu1 }
 0x2d1   : > { %v2262_v32 = vadd.f32 %v3228_v11, %v2101_v33  ;;  %v2112_v33 = vadd.f32 %v4513_v18, %v1604_v44 }
 0x2d2   : > { %v3230_v42 = vpop.f32.mrf.mxu1 }
 0x2d3   : > { %v3231_v14 = vadd.f32 %v3230_v42, %v3229_v34  ;;  %v2388_v13 = vmax.f32 %v2262_v32, 0.0 }
 0x2d4   : > { %v3232_v30 = vpop.f32.mrf.mxu1 }
 0x2d5   : > { %v2265_v4 = vadd.f32 %v3231_v14, %v2104_v45 }
 0x2d6   : > { %v3233_v24 = vpop.f32.mrf.mxu1 }
 0x2d7   : > { %v2389_v49 = vmax.f32 %v2265_v4, 0.0  ;;  %v3234_v40 = vadd.f32 %v3233_v24, %v3232_v30  ;;  %v2120_v24 = vadd.f32 %v4517_v17, %v1614_v36 }
 0x2d8   : > { %v3235_v16 = vpop.f32.mrf.mxu1 }
 0x2d9   : > { %v4626_v28 = vpack.c.bf16 %v2389_v49, %v2388_v13  ;;  %v2270_v20 = vadd.f32 %v3234_v40, %v2109_v52 }
 0x2da   : > { %v3236_v57 = vpop.f32.mrf.mxu1 }
 0x2db   : > { %v3237_v6 = vadd.f32 %v3236_v57, %v3235_v16  ;;  %v2390_v42 = vmax.f32 %v2270_v20, 0.0  ;;  %v2125_v16 = vadd.f32 %v4519_v39, %v4589_v47  ;;  %v2128_v57 = vadd.f32 %v4521_v2, %v4593_v7 }
 0x2dc   : > { %v3238_v62 = vpop.f32.mrf.mxu1  ;;  %v2136_v2 = vadd.f32 %v4525_v48, %v4579_v27 }
 0x2dd   : > { %v2273_v11 = vadd.f32 %v3237_v6, %v2112_v33 }
 0x2de   : > { %v3239_v12 = vpop.f32.mrf.mxu1 }
 0x2df   : > { %v2391_v34 = vmax.f32 %v2273_v11, 0.0  ;;  %v3240_v45 = vadd.f32 %v3239_v12, %v3238_v62  ;;  %v2133_v62 = vadd.f32 %v4523_v56, %v4575_v29  ;;  %v2141_v56 = vadd.f32 %v4529_v43, %v4561_v55 }
 0x2e0   : > { %v3241_v31 = vpop.f32.mrf.mxu1 }
 0x2e1   : > { %v4630_v32 = vpack.c.bf16 %v2391_v34, %v2390_v42  ;;  %v2278_v30 = vadd.f32 %v3240_v45, %v2117_v10  ;;  %v3643_v10 = vld [vmem:[#allocation2 + $0x604] ss:$16 sps:$4 sm:$0xff]  }
 0x2e2   : > { %v3242_v4 = vpop.f32.mrf.mxu1  ;;  %2564 = vmatprep.mubr.bf16.mxu0 %v3643_v10 }
 0x2e3   : > { %v3243_v40 = vadd.f32 %v3242_v4, %v3241_v31  ;;  %v2392_v44 = vmax.f32 %v2278_v30, 0.0 }
 0x2e4   : > { %v3244_v49 = vpop.f32.mrf.mxu1 }
 0x2e5   : > { %v2281_v9 = vadd.f32 %v3243_v40, %v2120_v24 }
 0x2e6   : > { %v3245_v18 = vpop.f32.mrf.mxu1 }
 0x2e7   : > { %v2393_v14 = vmax.f32 %v2281_v9, 0.0  ;;  %v3246_v63 = vadd.f32 %v3245_v18, %v3244_v49 }
 0x2e8   : > { %v3247_v0 = vpop.f32.mrf.mxu1 }
 0x2e9   : > { %v4635_v52 = vpack.c.bf16 %v2393_v14, %v2392_v44  ;;  %v2286_v13 = vadd.f32 %v3246_v63, %v2125_v16  ;;  %v2144_v44 = vadd.f32 %v4535_v60, %v4565_v21 }
 0x2ea   : > { %v3248_v20 = vpop.f32.mrf.mxu1 }
 0x2eb   : > { %v3249_v33 = vadd.f32 %v3248_v20, %v3247_v0  ;;  %v2394_v11 = vmax.f32 %v2286_v13, 0.0  ;;  %v2149_v0 = vadd.f32 %v4539_v26, %v4547_v50 }
 0x2ec   : > { %v3250_v17 = vpop.f32.mrf.mxu1 }
 0x2ed   : > { %v2289_v36 = vadd.f32 %v3249_v33, %v2128_v57 }
 0x2ee   : > { %v3251_v6 = vpop.f32.mrf.mxu1 }
 0x2ef   : > { %v2395_v39 = vmax.f32 %v2289_v36, 0.0  ;;  %v3252_v47 = vadd.f32 %v3251_v6, %v3250_v17  ;;  %v2152_v36 = vadd.f32 %v4543_v54, %v4551_v3 }
 0x2f0   : > { %v3253_v12 = vpop.f32.mrf.mxu1 }
 0x2f1   : > { %v4641_v42 = vpack.c.bf16 %v2395_v39, %v2394_v11  ;;  %v2294_v34 = vadd.f32 %v3252_v47, %v2133_v62  ;;  %v2157_v11 = vadd.f32 %v4549_v19, %v4533_v53 }
 0x2f2   : > { %v3254_v45 = vpop.f32.mrf.mxu1 }
 0x2f3   : > { %v3255_v7 = vadd.f32 %v3254_v45, %v3253_v12  ;;  %v2396_v29 = vmax.f32 %v2294_v34, 0.0  ;;  %v2160_v45 = vadd.f32 %v4553_v15, %v4537_v35 }
 0x2f4   : > { %v3256_v31 = vpop.f32.mrf.mxu1 }
 0x2f5   : > { %v2297_v30 = vadd.f32 %v3255_v7, %v2136_v2 }
 0x2f6   : > { %v3257_v4 = vpop.f32.mrf.mxu1 }
 0x2f7   : > { %v2397_v24 = vmax.f32 %v2297_v30, 0.0  ;;  %v3258_v40 = vadd.f32 %v3257_v4, %v3256_v31  ;;  %v2165_v31 = vadd.f32 %v4557_v1, %v4617_v61 }
 0x2f8   : > { %v3259_v49 = vpop.f32.mrf.mxu1 }
 0x2f9   : > { %v4647_v9 = vpack.c.bf16 %v2397_v24, %v2396_v29  ;;  %v2302_v18 = vadd.f32 %v3258_v40, %v2141_v56  ;;  %v2168_v40 = vadd.f32 %v4563_v37, %v4621_v22 }
 0x2fa   : > { %v3260_v16 = vpop.f32.mrf.mxu1 }
 0x2fb   : > { %v3261_v14 = vadd.f32 %v3260_v16, %v3259_v49  ;;  %v2398_v13 = vmax.f32 %v2302_v18, 0.0  ;;  %v2173_v16 = vadd.f32 %v4567_v8, %v4607_v41 }
 0x2fc   : > { %v3262_v48 = vpop.f32.mrf.mxu1 }
 0x2fd   : > { %v2305_v27 = vadd.f32 %v3261_v14, %v2144_v44 }
 0x2fe   : > { %v3263_v63 = vpop.f32.mrf.mxu1 }
 0x2ff   : > { %v2399_v43 = vmax.f32 %v2305_v27, 0.0  ;;  %v3264_v55 = vadd.f32 %v3263_v63, %v3262_v48 }
 0x300   : > { %v3265_v20 = vpop.f32.mrf.mxu1 }
 0x301   : > { %v4653_v57 = vpack.c.bf16 %v2399_v43, %v2398_v13  ;;  %v2310_v33 = vadd.f32 %v3264_v55, %v2149_v0  ;;  %v2176_v0 = vadd.f32 %v4571_v38, %v4611_v58  ;;  %v2181_v55 = vadd.f32 %v4577_v59, %v4597_v25 }
 0x302   : > { %v3266_v17 = vpop.f32.mrf.mxu1  ;;  %v2189_v59 = vadd.f32 %v4585_v5, %v4583_v23  ;;  %v4828_v5 = vld [vmem:[#allocation9_spill] sm:$0xff] }
 0x303   : > { %v3267_v6 = vadd.f32 %v3266_v17, %v3265_v20  ;;  %v2400_v39 = vmax.f32 %v2310_v33, 0.0 }
 0x304   : > { %v3268_v60 = vpop.f32.mrf.mxu1 }
 0x305   : > { %v2313_v21 = vadd.f32 %v3267_v6, %v2152_v36 }
 0x306   : > { %v3269_v62 = vpop.f32.mrf.mxu1 }
 0x307   : > { %v2401_v26 = vmax.f32 %v2313_v21, 0.0  ;;  %v3270_v50 = vadd.f32 %v3269_v62, %v3268_v60  ;;  %v2184_v60 = vadd.f32 %v4581_v46, %v4601_v51 }
 0x308   : > { %v3271_v47 = vpop.f32.mrf.mxu1 }
 0x309   : > { %v4659_v12 = vpack.c.bf16 %v2401_v26, %v2400_v39  ;;  %v2318_v10 = vadd.f32 %v3270_v50, %v2157_v11 }
 0x30a   : > { %v3272_v34 = vpop.f32.mrf.mxu1 }
 0x30b   : > { %v3273_v2 = vadd.f32 %v3272_v34, %v3271_v47  ;;  %v2402_v30 = vmax.f32 %v2318_v10, 0.0  ;;  %v4824_v10 = vld [vmem:[#allocation6_spill] sm:$0xff]  ;;  %v4825_v34 = vld [vmem:[#allocation12_spill] sm:$0xff] }
 0x30c   : > { %v3274_v54 = vpop.f32.mrf.mxu1 }
 0x30d   : > { %v2321_v3 = vadd.f32 %v3273_v2, %v2160_v45  ;;  %v2192_v45 = vadd.f32 %v4825_v34, %v4824_v10 }
 0x30e   : > { %v3275_v7 = vpop.f32.mrf.mxu1 }
 0x30f   : > { %v2403_v53 = vmax.f32 %v2321_v3, 0.0  ;;  %v3276_v19 = vadd.f32 %v3275_v7, %v3274_v54 }
 0x310   : > { %v3277_v4 = vpop.f32.mrf.mxu1 }
 0x311   : > { %v4665_v56 = vpack.c.bf16 %v2403_v53, %v2402_v30  ;;  %v2326_v29 = vadd.f32 %v3276_v19, %v2165_v31  ;;  %v4826_v19 = vld [vmem:[#allocation7_spill] sm:$0xff] }
 0x312   : > { %v3278_v24 = vpop.f32.mrf.mxu1 }
 0x313   : > { %v3279_v49 = vadd.f32 %v3278_v24, %v3277_v4  ;;  %v2404_v44 = vmax.f32 %v2326_v29, 0.0  ;;  %v4827_v4 = vld [vmem:[#allocation14_spill] sm:$0xff] }
 0x314   : > { %v3280_v35 = vpop.f32.mrf.mxu1  ;;  %v2197_v29 = vadd.f32 %v4827_v4, %v4826_v19 }
 0x315   : > { %v2329_v15 = vadd.f32 %v3279_v49, %v2168_v40  ;;  %v4829_v40 = vld [vmem:[#allocation10_spill] sm:$0xff] }
 0x316   : > { %v3281_v18 = vpop.f32.mrf.mxu1  ;;  %v2200_v49 = vadd.f32 %v4829_v40, %v4828_v5  ;;  %v4841_v5 = vld [vmem:[#allocation19_spill] sm:$0xff] }
 0x317   : > { %v2405_v1 = vmax.f32 %v2329_v15, 0.0  ;;  %v3282_v61 = vadd.f32 %v3281_v18, %v3280_v35 }
 0x318   : > { %v3283_v14 = vpop.f32.mrf.mxu1 }
 0x319   : > { %v2334_v48 = vadd.f32 %v3282_v61, %v2173_v16  ;;  %v4671_v27 = vpack.c.bf16 %v2405_v1, %v2404_v44 }
 0x31a   : > { %v3284_v63 = vpop.f32.mrf.mxu1 }
 0x31b   : > { %v3285_v13 = vadd.f32 %v3284_v63, %v3283_v14  ;;  %v2406_v20 = vmax.f32 %v2334_v48, 0.0  ;;  %v4830_v63 = vld [vmem:[#allocation8_spill] sm:$0xff] }
 0x31c   : > { %v3286_v37 = vpop.f32.mrf.mxu1 }
 0x31d   : > { %v2337_v22 = vadd.f32 %v3285_v13, %v2176_v0  ;;  %v4831_v0 = vld [vmem:[#allocation11_spill] sm:$0xff] }
 0x31e   : > { %v3287_v43 = vpop.f32.mrf.mxu1  ;;  %v2205_v13 = vadd.f32 %v4831_v0, %v4830_v63 }
 0x31f   : > { %v2407_v8 = vmax.f32 %v2337_v22, 0.0  ;;  %v3288_v41 = vadd.f32 %v3287_v43, %v3286_v37  ;;  %v4832_v43 = vld [vmem:[#allocation5_spill] sm:$0xff] }
 0x320   : > { %v3289_v33 = vpop.f32.mrf.mxu1 }
 0x321   : > { %v2342_v17 = vadd.f32 %v3288_v41, %v2181_v55  ;;  %v4677_v36 = vpack.c.bf16 %v2407_v8, %v2406_v20  ;;  %v4833_v55 = vld [vmem:[#allocation13_spill] sm:$0xff] }
 0x322   : > { %v3290_v6 = vpop.f32.mrf.mxu1  ;;  %v2208_v20 = vadd.f32 %v4833_v55, %v4832_v43 }
 0x323   : > { %v3291_v21 = vadd.f32 %v3290_v6, %v3289_v33  ;;  %v2408_v11 = vmax.f32 %v2342_v17, 0.0 }
 0x324   : > { %v3292_v38 = vpop.f32.mrf.mxu1 }
 0x325   : > { %v2345_v58 = vadd.f32 %v3291_v21, %v2184_v60 }
 0x326   : > { %v3293_v62 = vpop.f32.mrf.mxu1 }
 0x327   : > { %v2409_v39 = vmax.f32 %v2345_v58, 0.0  ;;  %v3294_v26 = vadd.f32 %v3293_v62, %v3292_v38  ;;  %v4834_v62 = vld [vmem:[#allocation16_spill] sm:$0xff] }
 0x328   : > { %v3295_v50 = vpop.f32.mrf.mxu1 }
 0x329   : > { %v4683_v25 = vpack.c.bf16 %v2409_v39, %v2408_v11  ;;  %v2350_v2 = vadd.f32 %v3294_v26, %v2189_v59  ;;  %v4835_v11 = vld [vmem:[#allocation17_spill] sm:$0xff]  ;;  %v4836_v59 = vld [vmem:[#allocation18_spill] sm:$0xff] }
 0x32a   : > { %v3296_v47 = vpop.f32.mrf.mxu1  ;;  %v2213_v39 = vadd.f32 %v4835_v11, %v4834_v62 }
 0x32b   : > { %v3297_v54 = vadd.f32 %v3296_v47, %v3295_v50  ;;  %v2410_v7 = vmax.f32 %v2350_v2, 0.0  ;;  %v4837_v47 = vld [vmem:[#allocation20_spill] sm:$0xff] }
 0x32c   : > { %v3298_v46 = vpop.f32.mrf.mxu1  ;;  %v2216_v10 = vadd.f32 %v4837_v47, %v4836_v59 }
 0x32d   : > { %v2353_v51 = vadd.f32 %v3297_v54, %v2192_v45 }
 0x32e   : > { %v3299_v3 = vpop.f32.mrf.mxu1 }
 0x32f   : > { %v2411_v31 = vmax.f32 %v2353_v51, 0.0  ;;  %v3300_v30 = vadd.f32 %v3299_v3, %v3298_v46 }
 0x330   : > { %v3301_v53 = vpop.f32.mrf.mxu1 }
 0x331   : > { %v2431_v24 = vpack.c.bf16 %v2411_v31, %v2410_v7  ;;  %v2358_v35 = vadd.f32 %v3300_v30, %v2197_v29  ;;  %v4838_v30 = vld [vmem:[#allocation26_spill] sm:$0xff] }
 0x332   : > { %v3302_v23 = vpop.f32.mrf.mxu1 }
 0x333   : > { %v3303_v15 = vadd.f32 %v3302_v23, %v3301_v53  ;;  %v2412_v1 = vmax.f32 %v2358_v35, 0.0  ;;  %v4839_v53 = vld [vmem:[#allocation15_spill] sm:$0xff]  ;;  %v4840_v23 = vld [vmem:[#allocation21_spill] sm:$0xff] }
 0x334   : > { %v3304_v18 = vpop.f32.mrf.mxu1  ;;  %v2221_v19 = vadd.f32 %v4839_v53, %v4838_v30  ;;  %v2224_v40 = vadd.f32 %v4841_v5, %v4840_v23 }
 0x335   : > { %v2361_v16 = vadd.f32 %v3303_v15, %v2200_v49 }
 0x336   : > { %v3305_v44 = vpop.f32.mrf.mxu1 }
 0x337   : > { %v2413_v61 = vmax.f32 %v2361_v16, 0.0  ;;  %v3306_v14 = vadd.f32 %v3305_v44, %v3304_v18 }
 0x338   : > { %v3307_v48 = vpop.f32.mrf.mxu1 }
 0x339   : > { %v2432_v37 = vpack.c.bf16 %v2413_v61, %v2412_v1  ;;  %v2366_v8 = vadd.f32 %v3306_v14, %v2205_v13  ;;  %v2490_v13 = vpop.permute.xlu1 %2489 }
 0x33a   : > { %v3308_v22 = vpop.f32.mrf.mxu1 }
 0x33b   : > { %v3309_v41 = vadd.f32 %v3308_v22, %v3307_v48  ;;  %v2414_v60 = vmax.f32 %v2366_v8, 0.0  ;;  %v2485_v22 = vpop.permute.xlu0 %2484 }
 0x33c   : > { %v3310_v33 = vpop.f32.mrf.mxu1 }
 0x33d   : > { %v2369_v17 = vadd.f32 %v3309_v41, %v2208_v20  ;;  %v2480_v20 = vpop.permute.xlu1 %2479 }
 0x33e   : > { %v3311_v6 = vpop.f32.mrf.mxu1 }
 0x33f   : > { %v2415_v21 = vmax.f32 %v2369_v17, 0.0  ;;  %v3312_v38 = vadd.f32 %v3311_v6, %v3310_v33  ;;  %v2475_v17 = vpop.permute.xlu0 %2474 }
 0x340   : > { %v3313_v58 = vpop.f32.mrf.mxu1 }
 0x341   : > { %v2433_v26 = vpack.c.bf16 %v2415_v21, %v2414_v60  ;;  %v2374_v34 = vadd.f32 %v3312_v38, %v2213_v39  ;;  %v2470_v39 = vpop.permute.xlu1 %2469 }
 0x342   : > { %v3314_v50 = vpop.f32.mrf.mxu1 }
 0x343   : > { %v3315_v45 = vadd.f32 %v3314_v50, %v3313_v58  ;;  %v2416_v51 = vmax.f32 %v2374_v34, 0.0  ;;  %v2465_v47 = vpop.permute.xlu0 %2464 }
 0x344   : > { %v3316_v2 = vpop.f32.mrf.mxu1 }
 0x345   : > { %v2377_v54 = vadd.f32 %v3315_v45, %v2216_v10 }
 0x346   : > { %v3317_v46 = vpop.f32.mrf.mxu1 }
 0x347   : > { %v2417_v3 = vmax.f32 %v2377_v54, 0.0  ;;  %v3318_v7 = vadd.f32 %v3317_v46, %v3316_v2 }
 0x348   : > { %v3319_v31 = vpop.f32.mrf.mxu1 }
 0x349   : > { %v2434_v4 = vpack.c.bf16 %v2417_v3, %v2416_v51  ;;  %v2382_v49 = vadd.f32 %v3318_v7, %v2221_v19 }
 0x34a   : > { %v3320_v29 = vpop.f32.mrf.mxu1 }
 0x34b   : > { %v3321_v35 = vadd.f32 %v3320_v29, %v3319_v31  ;;  %v2418_v18 = vmax.f32 %v2382_v49, 0.0  ;;  %v2460_v31 = vpop.permute.xlu1 %2459 }
 0x34d   : > { %v2385_v15 = vadd.f32 %v3321_v35, %v2224_v40 }
 0x34f   : > { %v2419_v16 = vmax.f32 %v2385_v15, 0.0  ;;  %v3654_v15 = vld [vmem:[#allocation2 + $0x6a0] ss:$16 sps:$4 sm:$0xff]  }
 0x351   : > { %v2435_v44 = vpack.c.bf16 %v2419_v16, %v2418_v18  ;;  %v3702_v18 = vmov 0.0   ;;  %v2635_v16 = vpop.permute.xlu1 %2634 }
 0x353   : > { %3322 = vmatprep.subr.bf16.mxu0 %v2435_v44 }
 0x354   : > { %3323 = vmatpush3.bf16.msra.mxu0 %v4665_v56  ;;  %v3647_v56 = vld [vmem:[#allocation2 + $0x644] ss:$16 sps:$4 sm:$0xff]  }
 0x355   : > { %3324 = vmatprep.subr.bf16.mxu0 %v2434_v4  ;;  %v2455_v4 = vpop.permute.xlu0 %2454 }
 0x358   : > { %3325 = vmatpush3.bf16.msra.mxu0 %v4659_v12  ;;  %v3641_v12 = vld [vmem:[#allocation2 + $0x600] ss:$16 sps:$4 sm:$0xff]  }
 0x359   : > { %3326 = vmatprep.subr.bf16.mxu0 %v2433_v26  ;;  %v2630_v44 = vpop.permute.xlu0 %2629 }
 0x35c   : > { %3327 = vmatpush3.bf16.msra.mxu0 %v4653_v57  ;;  %v3644_v57 = vld [vmem:[#allocation2 + $0x624] ss:$16 sps:$4 sm:$0xff]  }
 0x35d   : > { %3328 = vmatprep.subr.bf16.mxu0 %v2432_v37 }
 0x360   : > { %3329 = vmatpush3.bf16.msra.mxu0 %v4647_v9  ;;  %v3646_v9 = vld [vmem:[#allocation2 + $0x620] ss:$16 sps:$4 sm:$0xff]  }
 0x361   : > { %3330 = vmatprep.subr.bf16.mxu0 %v2431_v24 }
 0x364   : > { %3331 = vmatpush3.bf16.msra.mxu0 %v4641_v42  ;;  %v3649_v42 = vld [vmem:[#allocation2 + $0x640] ss:$16 sps:$4 sm:$0xff]  }
 0x365   : > { %3332 = vmatprep.subr.bf16.mxu0 %v4683_v25  ;;  %v3650_v25 = vld [vmem:[#allocation2 + $0x664] ss:$16 sps:$4 sm:$0xff]  }
 0x368   : > { %3333 = vmatpush3.bf16.msra.mxu0 %v4635_v52  ;;  %v3652_v52 = vld [vmem:[#allocation2 + $0x660] ss:$16 sps:$4 sm:$0xff]  }
 0x369   : > { %3334 = vmatprep.subr.bf16.mxu0 %v4677_v36  ;;  %v3653_v36 = vld [vmem:[#allocation2 + $0x680] ss:$16 sps:$4 sm:$0xff]  }
 0x36c   : > { %3335 = vmatpush3.bf16.msra.mxu0 %v4630_v32 }
 0x36d   : > { %3336 = vmatprep.subr.bf16.mxu0 %v4671_v27 }
 0x370   : > { %3337 = vmatpush3.bf16.msra.mxu0 %v4626_v28 }
 0x373   : > { %2565 = vmatmul.mubr.bf16.vlgmr.msra.gmra.mxu0 %v3641_v12 }
 0x374   : > { %2572 = vmatprep.mubr.bf16.mxu0 %v3644_v57 }
 0x37b   : > { %2573 = vmatmul.mubr.bf16.gmra.mxu0 %v3646_v9 }
 0x37c   : > { %2580 = vmatprep.mubr.bf16.mxu0 %v3647_v56 }
 0x383   : > { %2581 = vmatmul.mubr.bf16.gmra.mxu0 %v3649_v42  ;;  %v2625_v42 = vpop.permute.xlu1 %2624 }
 0x384   : > { %2588 = vmatprep.mubr.bf16.mxu0 %v3650_v25 }
 0x38b   : > { %2589 = vmatmul.mubr.bf16.gmra.mxu0 %v3652_v52  ;;  %v2620_v52 = vpop.permute.xlu0 %2619 }
 0x38c   : > { %3461 = vmatprep.mubr.msk.bf16.mxu0 %vm2647_vm2, %v3653_v36 }
 0x433   : > { %v3338_v32 = vpop.f32.mrf.mxu0 }
 0x435   : > { %v3339_v27 = vpop.f32.mrf.mxu0 }
 0x436   : > { %v3340_v46 = vadd.f32 %v3339_v27, %v3338_v32 }
 0x437   : > { %v3341_v28 = vpop.f32.mrf.mxu0 }
 0x438   : > { %v2567_v29 = vadd.f32 %v3340_v46, %v2455_v4 }
 0x439   : > { %v3342_v24 = vpop.f32.mrf.mxu0 }
 0x43a   : > { %v3343_v10 = vadd.f32 %v3342_v24, %v3341_v28  ;;  %v2597_v49 = vmax.f32 %v2567_v29, 0.0 }
 0x43b   : > { %v3344_v1 = vpop.f32.mrf.mxu0 }
 0x43c   : > { %v2570_v30 = vadd.f32 %v3343_v10, %v2460_v31 }
 0x43d   : > { %v3345_v61 = vpop.f32.mrf.mxu0 }
 0x43e   : > { %v3346_v26 = vadd.f32 %v3345_v61, %v3344_v1  ;;  %v2598_v5 = vmax.f32 %v2570_v30, 0.0 }
 0x43f   : > { %v3347_v14 = vpop.f32.mrf.mxu0 }
 0x440   : > { %v2575_v51 = vadd.f32 %v3346_v26, %v2465_v47  ;;  %v2605_v35 = vpack.c.bf16 %v2598_v5, %v2597_v49 }
 0x441   : > { %v3348_v48 = vpop.f32.mrf.mxu0 }
 0x442   : > { %v3349_v38 = vadd.f32 %v3348_v48, %v3347_v14  ;;  %v2599_v23 = vmax.f32 %v2575_v51, 0.0 }
 0x443   : > { %v3350_v63 = vpop.f32.mrf.mxu0 }
 0x444   : > { %v2578_v34 = vadd.f32 %v3349_v38, %v2470_v39 }
 0x445   : > { %v3351_v0 = vpop.f32.mrf.mxu0 }
 0x446   : > { %v3352_v60 = vadd.f32 %v3351_v0, %v3350_v63  ;;  %v2600_v53 = vmax.f32 %v2578_v34, 0.0  ;;  %v3655_v63 = vld [vmem:[#allocation2 + $0x6c0] ss:$16 sps:$4 sm:$0xff]  }
 0x447   : > { %v3353_v37 = vpop.f32.mrf.mxu0 }
 0x448   : > { %v2583_v50 = vadd.f32 %v3352_v60, %v2475_v17  ;;  %v2606_v40 = vpack.c.bf16 %v2600_v53, %v2599_v23 }
 0x449   : > { %v3354_v43 = vpop.f32.mrf.mxu0 }
 0x44a   : > { %v3355_v41 = vadd.f32 %v3354_v43, %v3353_v37  ;;  %v2601_v3 = vmax.f32 %v2583_v50, 0.0  ;;  %v2721_v43 = vpop.permute.xlu1 %2720 }
 0x44b   : > { %v3356_v55 = vpop.f32.mrf.mxu0 }
 0x44c   : > { %v2586_v58 = vadd.f32 %v3355_v41, %v2480_v20 }
 0x44d   : > { %v3357_v8 = vpop.f32.mrf.mxu0 }
 0x44e   : > { %v3358_v33 = vadd.f32 %v3357_v8, %v3356_v55  ;;  %v2602_v45 = vmax.f32 %v2586_v58, 0.0 }
 0x44f   : > { %v3359_v6 = vpop.f32.mrf.mxu0 }
 0x450   : > { %v2591_v62 = vadd.f32 %v3358_v33, %v2485_v22  ;;  %v2607_v19 = vpack.c.bf16 %v2602_v45, %v2601_v3 }
 0x451   : > { %v3360_v21 = vpop.f32.mrf.mxu0 }
 0x452   : > { %v3361_v11 = vadd.f32 %v3360_v21, %v3359_v6  ;;  %v2603_v2 = vmax.f32 %v2591_v62, 0.0  ;;  %v2775_v6 = vld [vmem:[#allocation2 + $0x6e0] sm:$0x1] }
 0x454   : > { %v2594_v59 = vadd.f32 %v3361_v11, %v2490_v13  ;;  %v2716_v13 = vpop.permute.xlu0 %2715 }
 0x456   : > { %v2604_v54 = vmax.f32 %v2594_v59, 0.0 }
 0x458   : > { %v2608_v7 = vpack.c.bf16 %v2604_v54, %v2603_v2  ;;  %v2780_v60 = vpop.permute.xlu0 %2779 }
 0x45a   : > { %3453 = vmatprep.subr.bf16.mxu0 %v2608_v7 }
 0x45b   : > { %3454 = vmatpush3.bf16.msra.mxu0 %v2608_v7 }
 0x45c   : > { %3455 = vmatprep.subr.bf16.mxu0 %v2607_v19 }
 0x45f   : > { %3456 = vmatpush3.bf16.msra.mxu0 %v2607_v19 }
 0x460   : > { %3457 = vmatprep.subr.bf16.mxu0 %v2606_v40 }
 0x463   : > { %3458 = vmatpush3.bf16.msra.mxu0 %v2606_v40 }
 0x464   : > { %3459 = vmatprep.subr.bf16.mxu0 %v2605_v35 }
 0x467   : > { %3460 = vmatpush3.bf16.msra.mxu0 %v2605_v35 }
 0x468   : > { %3465 = vmatprep.subr.bf16.mxu0 %v3702_v18 }
 0x46a   : > { %3462 = vmatmul.mubr.msk.bf16.vlgmr.msra.gmra.mxu0 %vm2647_vm2, %v3654_v15 }
 0x46b   : > { %3469 = vmatprep.mubr.msk.bf16.mxu0 %vm3703_vm3, %v3702_v18 }
 0x52a   : > { %v3463_v12 = vpop.f32.mrf.mxu0 }
 0x52b   : > { %v2697_v9 = vadd.f32 %v3463_v12, %v2630_v44 }
 0x52c   : > { %v2688_v57 = vpop.f32.mrf.mxu0 }
 0x52d   : > { %v2705_v32 = vmax.f32 %v2697_v9, 0.0  ;;  %v2689_v27 = vadd.f32 %v2688_v57, %v2620_v52 }
 0x52e   : > { %v3464_v56 = vpop.f32.mrf.mxu0 }
 0x52f   : > { %v2700_v25 = vadd.f32 %v3464_v56, %v2635_v16  ;;  %v2703_v14 = vmax.f32 %v2689_v27, 0.0 }
 0x530   : > { %v2691_v36 = vpop.f32.mrf.mxu0 }
 0x531   : > { %v2706_v28 = vmax.f32 %v2700_v25, 0.0  ;;  %v2692_v24 = vadd.f32 %v2691_v36, %v2625_v42 }
 0x533   : > { %v2708_v1 = vpack.c.bf16 %v2706_v28, %v2705_v32  ;;  %v2704_v61 = vmax.f32 %v2692_v24, 0.0 }
 0x535   : > { %3466 = vmatpush3.bf16.msra.mxu0 %v2708_v1  ;;  %v2707_v48 = vpack.c.bf16 %v2704_v61, %v2703_v14 }
 0x536   : > { %3467 = vmatprep.subr.bf16.mxu0 %v3702_v18 }
 0x539   : > { %3468 = vmatpush3.bf16.msra.mxu0 %v2707_v48 }
 0x53a   : > { %3473 = vmatprep.subr.bf16.mxu0 %v3702_v18 }
 0x53c   : > { %3470 = vmatmul.mubr.msk.bf16.vlgmr.msra.gmra.mxu0 %vm984_vm6, %v3655_v63 }
 0x53d   : > { %3475 = vmatprep.mubr.msk.bf16.mxu0 %vm3703_vm3, %v3702_v18 }
 0x5fc   : > { %v2765_v0 = vpop.f32.mrf.mxu0 }
 0x5fd   : > { %v2766_v22 = vadd.f32 %v2765_v0, %v2716_v13 }
 0x5fe   : > { %v3471_v37 = vpop.f32.mrf.mxu0 }
 0x5ff   : > { %v2772_v41 = vmax.f32 %v2766_v22, 0.0 }
 0x600   : > { %v2768_v55 = vpop.f32.mrf.mxu0 }
 0x601   : > { %v2769_v20 = vadd.f32 %v2768_v55, %v2721_v43 }
 0x602   : > { %v3472_v8 = vpop.f32.mrf.mxu0 }
 0x603   : > { %v2773_v33 = vmax.f32 %v2769_v20, 0.0 }
 0x605   : > { %v2774_v17 = vpack.c.bf16 %v2773_v33, %v2772_v41 }
 0x607   : > { %3474 = vmatpush3.bf16.msra.mxu0 %v2774_v17 }
 0x60a   : > { %3476 = vmatmul.mubr.msk.bf16.vlgmr.msra.gmra.mxu0 %vm2782_vm4, %v2775_v6 }
 0x6ca   : > { %v2820_v21 = vpop.f32.mrf.mxu0 }
 0x6cb   : > { %v2821_v38 = vadd.f32 %v2820_v21, %v2780_v60 }
 0x6cc   : > { %v3477_v58 = vpop.f32.mrf.mxu0 }
 0x6cd   : > { %v2826_v62 = vand.u32 2147483647, %v2821_v38  ;;  %vm2830_vm6 = vcmp.ge.f32.partialorder %v2821_v38, 0.0 }
 0x6ce   : > { %v2823_v11 = vpop.f32.mrf.mxu0 }
 0x6cf   : > { %v2827_v39 = vsub.f32 0.0, %v2826_v62 }
 0x6d0   : > { %v3478_v26 = vpop.f32.mrf.mxu0 }
 0x6d1   : > { %v2828_v50 = vmul.f32 1.442695, %v2827_v39 }
 0x6d3   : > { %3656 = vpow2.f32 %v2828_v50 }
 0x6e0   : > { %v3657_v59 = vpop.eup %3656 }
 0x6e1   : > { %v2832_v47 = vadd.f32 1.0, %v3657_v59  ;;  %v2831_v34 = vsel %vm2830_vm6, 1.0, %v3657_v59 }
 0x6e3   : > { %3658 = vrcp.f32 %v2832_v47 }
 0x6f0   : > { %v3659_v10 = vpop.eup %3658 }
 0x6f1   : > { %v2834_v45 = vmul.f32 %v3659_v10, %v2831_v34 }
 0x6f3   : > { %2835 = vst [vmem:[%s203_s29] sm:$0x1] %v2834_v45 }
 0x6f4 PF: > { %s14_s12 = sadd.s32 1, %s3696_s12  }
 0x6f5   : > { %p11_p2 = scmp.ge.s32.totalorder %s14_s12, 4  }
 0x6f7   :  { %13 = sbr.rel (!%p11_p2) target bundleno = 1 (0x1), region = 67 }
 0x6fc   :  { %2853 = vsyncpa [#allocation3], 1 }
 0x6fd   :  { %2855 = vsyncpa [#allocation3 + $0x1], 1 }

</bundles_post_ra>
